<compile_context>
chip_gen: v6e
topology: v6e:2x2x1
jax: 0.10.0
libtpu: 0.0.40
codegen_flags: <defaults>
</compile_context>

<pallas_src>
import jax
import jax.numpy as jnp
from jax import lax
from jax.experimental import pallas as pl
from jax.experimental.pallas import tpu as pltpu


def _round_up(x, m):
    return (x + m - 1) // m * m


def _vq_kernel(x_ref, neg2e_ref, et_hi_ref, et_lo_ref, esq_ref,
               q_ref, sse_ref, sse_row_ref):
    """One (batch-block, hw-tile) grid step of vector quantization.

    x_ref       : (Bb, D, T)  latents tile (channels on sublanes, pixels on lanes)
    neg2e_ref   : (C, Kc, D)  codebook chunks, pre-scaled by -2 (f32, or bf16 opt.)
    et_hi_ref   : (C, D, Kc)  codebook^T chunks, bf16-representable part (f32)
    et_lo_ref   : (C, D, Kc)  codebook^T chunks, residual part (f32)
    esq_ref     : (C, Kc, 1)  ||e_k||^2 per chunk (padded rows hold 1e30)
    q_ref       : (Bb, D, T)  quantized output tile (lane-dense)
    sse_ref     : (1, 1, 1)   per-batch-block sum of squared quantization error
    sse_row_ref : (1, T)      lane-wise SSE accumulator (VMEM scratch)
    """
    t_id = pl.program_id(1)
    num_chunks = neg2e_ref.shape[0]
    k_chunk = neg2e_ref.shape[1]
    block_b = x_ref.shape[0]
    unroll_chunks = num_chunks <= 4

    @pl.when(t_id == 0)
    def _init():
        sse_row_ref[...] = jnp.zeros_like(sse_row_ref)

    for b in range(block_b):            # static unroll over the batch sub-block
        x = x_ref[b].astype(jnp.float32)               # (D, T)
        x_mm = x.astype(neg2e_ref.dtype)               # optional bf16 scores path
        T = x.shape[1]

        # ---- pass 1: streamed first-minimum argmin over codebook chunks ----
        def argmin_chunk(c, carry):
            run_min, run_idx = carry
            # scores[k, n] = ||e_k||^2 - 2 e_k . x_n  (||x_n||^2 dropped: argmin-invariant)
            scores = esq_ref[c] + jnp.dot(
                neg2e_ref[c], x_mm, preferred_element_type=jnp.float32)   # (Kc, T)
            c_min = jnp.min(scores, axis=0, keepdims=True)                # (1, T)
            iota = lax.broadcasted_iota(jnp.int32, scores.shape, 0).astype(jnp.float32)
            masked = jnp.where(scores <= c_min, iota, float(k_chunk))
            k0 = jnp.asarray(c * k_chunk, jnp.float32)
            c_idx = jnp.min(masked, axis=0, keepdims=True) + k0           # (1, T)
            better = c_min < run_min       # strict '<': earlier chunk wins ties
            return (jnp.where(better, c_min, run_min),
                    jnp.where(better, c_idx, run_idx))

        _, idx = lax.fori_loop(
            0, num_chunks, argmin_chunk,
            (jnp.full((1, T), jnp.inf, jnp.float32),
             jnp.zeros((1, T), jnp.float32)),
            unroll=unroll_chunks)

        # ---- pass 2: streamed reconstruction  quant[:, n] = emb[idx_n, :] ----
        def recon_chunk(c, acc):
            k0 = jnp.asarray(c * k_chunk, jnp.float32)
            iota = lax.broadcasted_iota(jnp.int32, (k_chunk, T), 0).astype(jnp.float32)
            one_hot = (iota + k0 == idx).astype(jnp.float32)              # (Kc, T)
            # hi + lo error-free split: exact f32 codebook rows even when the MXU
            # runs bf16 passes at default precision.
            acc = acc + jnp.dot(et_hi_ref[c], one_hot,
                                preferred_element_type=jnp.float32)
            acc = acc + jnp.dot(et_lo_ref[c], one_hot,
                                preferred_element_type=jnp.float32)
            return acc

        quant = lax.fori_loop(0, num_chunks, recon_chunk,
                              jnp.zeros_like(x), unroll=unroll_chunks)

        q_ref[b] = quant.astype(q_ref.dtype)

        # Fused VQ-loss: lane-wise partial sums; lane reduce deferred to the end.
        d = quant - x
        sse_row_ref[...] = sse_row_ref[...] + jnp.sum(d * d, axis=0, keepdims=True)

    @pl.when(t_id == pl.num_programs(1) - 1)
    def _finalize():
        sse_ref[0] = jnp.sum(sse_row_ref[...], axis=1, keepdims=True)


def vector_quantizer_forward(latents, embedding, *, beta=0.25,
                             block_hw=None, block_b=None,
                             scores_in_bf16=False,
                             vmem_budget_bytes=16 * 1024 * 1024):
    """Forward pass of the VQ-VAE VectorQuantizer.

    latents   : (B, D, H, W) NCHW, as in the PyTorch module.
    embedding : (K, D) codebook.
    Returns (quantized (B, D, H, W), vq_loss scalar) whose forward values match
    the PyTorch module (the straight-through output's forward value is `quantized`).
    """
    B, D, H, W = latents.shape
    K, D2 = embedding.shape
    if D != D2:
        raise ValueError("embedding_dim must match latent channels")
    HW = H * W

    # ---- codebook prep (tiny; reused across all B * HW/block_hw grid steps) ----
    D_pad = _round_up(D, 8)            # sublane alignment
    K_pad = _round_up(K, 128)          # fill MXU rows; padded rows can never win
    k_chunk = 256 if K_pad % 256 == 0 else 128
    num_chunks = K_pad // k_chunk

    emb = embedding.astype(jnp.float32)
    emb_p = jnp.zeros((K_pad, D_pad), jnp.float32).at[:K, :D].set(emb)
    real = (jnp.arange(K_pad) < K)[:, None]
    esq = jnp.where(real, jnp.sum(emb_p * emb_p, axis=1, keepdims=True),
                    jnp.float32(1e30))                       # (K_pad, 1)
    neg2e = (-2.0) * emb_p                                   # -2 folded into codebook
    if scores_in_bf16:
        neg2e = neg2e.astype(jnp.bfloat16)                   # optional fast-scores path
    embt = emb_p.T                                           # (D_pad, K_pad)
    et_hi = embt.astype(jnp.bfloat16).astype(jnp.float32)
    et_lo = embt - et_hi
    # Chunk along K so the kernel streams with a leading-axis (dynamic) index.
    neg2e_c = neg2e.reshape(num_chunks, k_chunk, D_pad)
    esq_c = esq.reshape(num_chunks, k_chunk, 1)
    et_hi_c = et_hi.reshape(D_pad, num_chunks, k_chunk).transpose(1, 0, 2)
    et_lo_c = et_lo.reshape(D_pad, num_chunks, k_chunk).transpose(1, 0, 2)

    # ---- latents view: (B, D, HW); pad channels only if D is not a multiple of 8
    x = latents.reshape(B, D, HW)
    if D_pad != D:
        x = jnp.pad(x, ((0, 0), (0, D_pad - D), (0, 0)))

    # ---- tiling from a per-step VMEM budget (works for v5e/v6e/v7x defaults) ----
    itemsize = 4
    resident = 2 * itemsize * (3 * K_pad * D_pad + K_pad * 128)   # codebook slabs
    per_pixel = itemsize * (3 * k_chunk + 2 * D_pad + 4)          # chunk intermediates
    per_pixel_slab = 4 * itemsize * D_pad                         # in+out, double-buffered
    budget = max(vmem_budget_bytes - resident, 1 << 20)

    if block_hw is None:
        cands = [c for c in range(min(HW, 2048), 0, -1)
                 if HW % c == 0 and (c == HW or c % 128 == 0)]
        if not cands:
            cands = [HW]
        block_hw = cands[-1]
        for c in cands:
            if c * (per_pixel + per_pixel_slab) <= budget:
                block_hw = c
                break
    assert HW % block_hw == 0
    assert block_hw == HW or block_hw % 128 == 0
    n_t = HW // block_hw

    if block_b is None:
        block_b = 1
        if n_t == 1:                   # tiny H*W: amortize per-step overhead over batch
            max_bb = max(1, 4096 // block_hw)
            for cand in range(min(B, max_bb), 0, -1):
                if B % cand:
                    continue
                if block_hw * (per_pixel + cand * per_pixel_slab) <= budget:
                    block_b = cand
                    break
    assert B % block_b == 0
    n_b = B // block_b

    est = resident + block_hw * (per_pixel + block_b * per_pixel_slab)
    vmem_limit = int(min(48 * 1024 * 1024, max(32 * 1024 * 1024, 2 * est)))

    q, sse = pl.pallas_call(
        _vq_kernel,
        out_shape=(
            jax.ShapeDtypeStruct((B, D_pad, HW), latents.dtype),
            jax.ShapeDtypeStruct((n_b, 1, 1), jnp.float32),
        ),
        grid=(n_b, n_t),
        in_specs=[
            pl.BlockSpec((block_b, D_pad, block_hw), lambda b, t: (b, 0, t)),
            pl.BlockSpec((num_chunks, k_chunk, D_pad), lambda b, t: (0, 0, 0)),
            pl.BlockSpec((num_chunks, D_pad, k_chunk), lambda b, t: (0, 0, 0)),
            pl.BlockSpec((num_chunks, D_pad, k_chunk), lambda b, t: (0, 0, 0)),
            pl.BlockSpec((num_chunks, k_chunk, 1), lambda b, t: (0, 0, 0)),
        ],
        out_specs=(
            pl.BlockSpec((block_b, D_pad, block_hw), lambda b, t: (b, 0, t)),
            pl.BlockSpec((1, 1, 1), lambda b, t: (b, 0, 0)),   # per-batch-block SSE
        ),
        scratch_shapes=[pltpu.VMEM((1, block_hw), jnp.float32)],
        compiler_params=pltpu.CompilerParams(
            dimension_semantics=("parallel", "arbitrary"),
            vmem_limit_bytes=vmem_limit),
    )(x, neg2e_c, et_hi_c, et_lo_c, esq_c)

    if D_pad != D:
        q = q[:, :D, :]
    quantized = q.reshape(B, D, H, W)
    mse = jnp.sum(sse) / (B * D * H * W)
    vq_loss = (1.0 + beta) * mse   # forward value of beta*commitment + embedding loss
    # TODO(synk): straight-through / detach() gradient semantics are an autograd
    # concern; only the forward values of the PyTorch module are computed here.
    return quantized, vq_loss


def reference_forward(latents, embedding, beta=0.25):
    """Pure-JAX NHWC reference mirroring the PyTorch module's forward exactly."""
    B, D, H, W = latents.shape
    lat = jnp.transpose(latents, (0, 2, 3, 1))                  # NCHW -> NHWC
    flat = lat.reshape(-1, D)
    dist = (jnp.sum(flat ** 2, axis=1, keepdims=True)
            + jnp.sum(embedding ** 2, axis=1)[None, :]
            - 2.0 * jnp.dot(flat, embedding.T, precision=lax.Precision.HIGHEST))
    inds = jnp.argmin(dist, axis=1)
    quant = embedding[inds].reshape(B, H, W, D)
    mse = jnp.mean((quant - lat) ** 2)
    vq_loss = beta * mse + mse       # commitment_loss == embedding_loss in value
    return jnp.transpose(quant, (0, 3, 1, 2)), vq_loss


if __name__ == "__main__":
    # Small shapes consistent with the module: batch=2, embedding_dim=32,
    # 16x16 latent grid, 64 codebook entries (K is padded to 128 in the kernel).
    B, D, H, W, K = 2, 32, 16, 16, 64
    beta = 0.25

    key = jax.random.PRNGKey(0)
    k_emb, k_idx, k_noise = jax.random.split(key, 3)

    # Codebook with the module's init: uniform(-1/K, 1/K).
    embedding = jax.random.uniform(k_emb, (K, D), jnp.float32,
                                   minval=-1.0 / K, maxval=1.0 / K)
    # Latents = codebook entries + small noise so the nearest code is unambiguous.
    true_idx = jax.random.randint(k_idx, (B, H, W), 0, K)
    lat_nhwc = embedding[true_idx] + 2e-3 * jax.random.normal(
        k_noise, (B, H, W, D), jnp.float32)
    latents = jnp.transpose(lat_nhwc, (0, 3, 1, 2))             # NCHW input

    quant, vq_loss = vector_quantizer_forward(latents, embedding, beta=beta)
    quant = jax.block_until_ready(quant)
    vq_loss = jax.block_until_ready(vq_loss)

    quant_ref, loss_ref = reference_forward(latents, embedding, beta=beta)
    assert quant.shape == quant_ref.shape == (B, D, H, W)

    max_err = float(jnp.max(jnp.abs(quant - quant_ref)))
    if max_err > 1e-5:
        raise AssertionError(f"quantized mismatch, max abs err = {max_err}")
    loss_err = abs(float(vq_loss) - float(loss_ref))
    if loss_err > 1e-3 * max(abs(float(loss_ref)), 1e-12) + 1e-9:
        raise AssertionError(
            f"vq_loss mismatch: kernel={float(vq_loss)} ref={float(loss_ref)}")
    print("KERNEL_OK")
</pallas_src>

<mosaic_0001>
module attributes {stable_mosaic.version = 11 : i64} {
  func.func @_vq_kernel(%arg0: i32, %arg1: i32, %arg2: memref<2x32x256xf32, #tpu.memory_space<vmem>>, %arg3: memref<1x128x32xf32, #tpu.memory_space<vmem>>, %arg4: memref<1x32x128xf32, #tpu.memory_space<vmem>>, %arg5: memref<1x32x128xf32, #tpu.memory_space<vmem>>, %arg6: memref<1x128x1xf32, #tpu.memory_space<vmem>>, %arg7: memref<2x32x256xf32, #tpu.memory_space<vmem>>, %arg8: memref<1x1x1xf32, #tpu.memory_space<vmem>>, %arg9: memref<1x256xf32, #tpu.memory_space<vmem>>) attributes {dimension_semantics = [#tpu.dimension_semantics<parallel>, #tpu.dimension_semantics<arbitrary>], iteration_bounds = array<i64: 1, 1>, scalar_prefetch = 0 : i64, scratch_operands = 1 : i64, tpu.core_type = #tpu.core_type<tc>, window_params = [{transform_indices = @transform_0, window_bounds = array<i64: 2, 32, 256>}, {pipeline_mode = #tpu.pipeline_mode<synchronous>, transform_indices = @transform_1, window_bounds = array<i64: 1, 128, 32>}, {pipeline_mode = #tpu.pipeline_mode<synchronous>, transform_indices = @transform_2, window_bounds = array<i64: 1, 32, 128>}, {pipeline_mode = #tpu.pipeline_mode<synchronous>, transform_indices = @transform_3, window_bounds = array<i64: 1, 32, 128>}, {pipeline_mode = #tpu.pipeline_mode<synchronous>, transform_indices = @transform_4, window_bounds = array<i64: 1, 128, 1>}, {transform_indices = @transform_5, window_bounds = array<i64: 2, 32, 256>}, {transform_indices = @transform_6, window_bounds = array<i64: 1, 1, 1>}]} {
    %c0_i32 = arith.constant 0 : i32
    %0 = arith.cmpi eq, %arg1, %c0_i32 : i32
    %1 = arith.extui %0 : i1 to i32
    %c0_i32_0 = arith.constant 0 : i32
    %2 = arith.cmpi ne, %1, %c0_i32_0 : i32
    scf.if %2 {
      %cst_66 = arith.constant 0.000000e+00 : f32
      %128 = vector.broadcast %cst_66 : f32 to vector<1x256xf32>
      %c0_67 = arith.constant 0 : index
      %c0_68 = arith.constant 0 : index
      %129 = vector.load %arg9[%c0_67, %c0_68] : memref<1x256xf32, #tpu.memory_space<vmem>>, vector<1x256xf32>
      tpu.vector_store %arg9[%c0_67, %c0_68], %128 {strides = array<i32>} : memref<1x256xf32, #tpu.memory_space<vmem>>, vector<1x256xf32>,
    } else {
    }
    %c0 = arith.constant 0 : index
    %c0_1 = arith.constant 0 : index
    %c0_2 = arith.constant 0 : index
    %3 = vector.load %arg2[%c0, %c0_1, %c0_2] : memref<2x32x256xf32, #tpu.memory_space<vmem>>, vector<1x32x256xf32>
    %4 = vector.shape_cast %3 : vector<1x32x256xf32> to vector<32x256xf32>
    %cst = arith.constant 0x7F800000 : f32
    %5 = vector.broadcast %cst : f32 to vector<1x256xf32>
    %cst_3 = arith.constant 0.000000e+00 : f32
    %6 = vector.broadcast %cst_3 : f32 to vector<1x256xf32>
    %c0_i32_4 = arith.constant 0 : i32
    %7 = arith.index_cast %c0_i32_4 : i32 to index
    %c0_5 = arith.constant 0 : index
    %c0_6 = arith.constant 0 : index
    %8 = vector.load %arg6[%7, %c0_5, %c0_6] : memref<1x128x1xf32, #tpu.memory_space<vmem>>, vector<1x128x1xf32>
    %9 = vector.shape_cast %8 : vector<1x128x1xf32> to vector<128x1xf32>
    %10 = arith.index_cast %c0_i32_4 : i32 to index
    %c0_7 = arith.constant 0 : index
    %c0_8 = arith.constant 0 : index
    %11 = vector.load %arg3[%10, %c0_7, %c0_8] : memref<1x128x32xf32, #tpu.memory_space<vmem>>, vector<1x128x32xf32>
    %12 = vector.shape_cast %11 : vector<1x128x32xf32> to vector<128x32xf32>
    %cst_9 = arith.constant dense<0.000000e+00> : vector<128x256xf32>
    %13 = tpu.matmul %12, %4, %cst_9 {dimension_numbers = #tpu.dot_dimension_numbers<[1], [0], [0], [1], [0, 0, 1, 1], [], []>} : vector<128x32xf32>, vector<32x256xf32>, vector<128x256xf32> -> vector<128x256xf32>
    %14 = vector.broadcast %9 : vector<128x1xf32> to vector<128x256xf32>
    %15 = arith.addf %14, %13 : vector<128x256xf32>
    %cst_10 = arith.constant dense<0x7F800000> : vector<256xf32>
    %16 = vector.multi_reduction <minimumf>, %15, %cst_10 [0] : vector<128x256xf32> to vector<256xf32>
    %17 = vector.shape_cast %16 : vector<256xf32> to vector<1x256xf32>
    %18 = tpu.iota {dimensions = array<i32: 0>} : vector<128x256xi32>
    %19 = arith.sitofp %18 : vector<128x256xi32> to vector<128x256xf32>
    %20 = vector.broadcast %17 : vector<1x256xf32> to vector<128x256xf32>
    %21 = arith.cmpf ole, %15, %20 : vector<128x256xf32>
    %cst_11 = arith.constant 1.280000e+02 : f32
    %22 = vector.broadcast %cst_11 : f32 to vector<128x256xf32>
    %23 = arith.select %21, %19, %22 : vector<128x256xi1>, vector<128x256xf32>
    %c128_i32 = arith.constant 128 : i32
    %24 = arith.muli %c0_i32_4, %c128_i32 : i32
    %25 = arith.sitofp %24 : i32 to f32
    %cst_12 = arith.constant dense<0x7F800000> : vector<256xf32>
    %26 = vector.multi_reduction <minimumf>, %23, %cst_12 [0] : vector<128x256xf32> to vector<256xf32>
    %27 = vector.shape_cast %26 : vector<256xf32> to vector<1x256xf32>
    %28 = vector.broadcast %25 : f32 to vector<1x256xf32>
    %29 = arith.addf %27, %28 : vector<1x256xf32>
    %30 = arith.cmpf olt, %17, %5 : vector<1x256xf32>
    %31 = arith.select %30, %17, %5 : vector<1x256xi1>, vector<1x256xf32>
    %32 = arith.select %30, %29, %6 : vector<1x256xi1>, vector<1x256xf32>
    %c1_i32 = arith.constant 1 : i32
    %cst_13 = arith.constant 0.000000e+00 : f32
    %33 = vector.broadcast %cst_13 : f32 to vector<32x256xf32>
    %c0_i32_14 = arith.constant 0 : i32
    %c128_i32_15 = arith.constant 128 : i32
    %34 = arith.muli %c0_i32_14, %c128_i32_15 : i32
    %35 = arith.sitofp %34 : i32 to f32
    %36 = tpu.iota {dimensions = array<i32: 0>} : vector<128x256xi32>
    %37 = arith.sitofp %36 : vector<128x256xi32> to vector<128x256xf32>
    %38 = vector.broadcast %35 : f32 to vector<128x256xf32>
    %39 = arith.addf %37, %38 : vector<128x256xf32>
    %40 = vector.broadcast %32 : vector<1x256xf32> to vector<128x256xf32>
    %41 = arith.cmpf oeq, %39, %40 : vector<128x256xf32>
    %42 = arith.extui %41 : vector<128x256xi1> to vector<128x256xi32>
    %43 = arith.sitofp %42 : vector<128x256xi32> to vector<128x256xf32>
    %44 = arith.index_cast %c0_i32_14 : i32 to index
    %c0_16 = arith.constant 0 : index
    %c0_17 = arith.constant 0 : index
    %45 = vector.load %arg4[%44, %c0_16, %c0_17] : memref<1x32x128xf32, #tpu.memory_space<vmem>>, vector<1x32x128xf32>
    %46 = vector.shape_cast %45 : vector<1x32x128xf32> to vector<32x128xf32>
    %cst_18 = arith.constant dense<0.000000e+00> : vector<32x256xf32>
    %47 = tpu.matmul %46, %43, %cst_18 {dimension_numbers = #tpu.dot_dimension_numbers<[1], [0], [0], [1], [0, 0, 1, 1], [], []>} : vector<32x128xf32>, vector<128x256xf32>, vector<32x256xf32> -> vector<32x256xf32>
    %48 = arith.addf %33, %47 : vector<32x256xf32>
    %49 = arith.index_cast %c0_i32_14 : i32 to index
    %c0_19 = arith.constant 0 : index
    %c0_20 = arith.constant 0 : index
    %50 = vector.load %arg5[%49, %c0_19, %c0_20] : memref<1x32x128xf32, #tpu.memory_space<vmem>>, vector<1x32x128xf32>
    %51 = vector.shape_cast %50 : vector<1x32x128xf32> to vector<32x128xf32>
    %cst_21 = arith.constant dense<0.000000e+00> : vector<32x256xf32>
    %52 = tpu.matmul %51, %43, %cst_21 {dimension_numbers = #tpu.dot_dimension_numbers<[1], [0], [0], [1], [0, 0, 1, 1], [], []>} : vector<32x128xf32>, vector<128x256xf32>, vector<32x256xf32> -> vector<32x256xf32>
    %53 = arith.addf %48, %52 : vector<32x256xf32>
    %c1_i32_22 = arith.constant 1 : i32
    %c0_23 = arith.constant 0 : index
    %c0_24 = arith.constant 0 : index
    %c0_25 = arith.constant 0 : index
    %54 = vector.load %arg7[%c0_23, %c0_24, %c0_25] : memref<2x32x256xf32, #tpu.memory_space<vmem>>, vector<1x32x256xf32>
    %55 = vector.shape_cast %54 : vector<1x32x256xf32> to vector<32x256xf32>
    %56 = vector.shape_cast %53 : vector<32x256xf32> to vector<1x32x256xf32>
    tpu.vector_store %arg7[%c0_23, %c0_24, %c0_25], %56 {strides = array<i32>} : memref<2x32x256xf32, #tpu.memory_space<vmem>>, vector<1x32x256xf32>,
    %57 = arith.subf %53, %4 : vector<32x256xf32>
    %c0_26 = arith.constant 0 : index
    %c0_27 = arith.constant 0 : index
    %58 = vector.load %arg9[%c0_26, %c0_27] : memref<1x256xf32, #tpu.memory_space<vmem>>, vector<1x256xf32>
    %59 = arith.mulf %57, %57 : vector<32x256xf32>
    %cst_28 = arith.constant dense<0.000000e+00> : vector<256xf32>
    %60 = vector.multi_reduction <add>, %59, %cst_28 [0] : vector<32x256xf32> to vector<256xf32>
    %61 = vector.shape_cast %60 : vector<256xf32> to vector<1x256xf32>
    %62 = arith.addf %58, %61 : vector<1x256xf32>
    %c0_29 = arith.constant 0 : index
    %c0_30 = arith.constant 0 : index
    %63 = vector.load %arg9[%c0_29, %c0_30] : memref<1x256xf32, #tpu.memory_space<vmem>>, vector<1x256xf32>
    tpu.vector_store %arg9[%c0_29, %c0_30], %62 {strides = array<i32>} : memref<1x256xf32, #tpu.memory_space<vmem>>, vector<1x256xf32>,
    %c1 = arith.constant 1 : index
    %c0_31 = arith.constant 0 : index
    %c0_32 = arith.constant 0 : index
    %64 = vector.load %arg2[%c1, %c0_31, %c0_32] : memref<2x32x256xf32, #tpu.memory_space<vmem>>, vector<1x32x256xf32>
    %65 = vector.shape_cast %64 : vector<1x32x256xf32> to vector<32x256xf32>
    %cst_33 = arith.constant 0x7F800000 : f32
    %66 = vector.broadcast %cst_33 : f32 to vector<1x256xf32>
    %cst_34 = arith.constant 0.000000e+00 : f32
    %67 = vector.broadcast %cst_34 : f32 to vector<1x256xf32>
    %c0_i32_35 = arith.constant 0 : i32
    %68 = arith.index_cast %c0_i32_35 : i32 to index
    %c0_36 = arith.constant 0 : index
    %c0_37 = arith.constant 0 : index
    %69 = vector.load %arg6[%68, %c0_36, %c0_37] : memref<1x128x1xf32, #tpu.memory_space<vmem>>, vector<1x128x1xf32>
    %70 = vector.shape_cast %69 : vector<1x128x1xf32> to vector<128x1xf32>
    %71 = arith.index_cast %c0_i32_35 : i32 to index
    %c0_38 = arith.constant 0 : index
    %c0_39 = arith.constant 0 : index
    %72 = vector.load %arg3[%71, %c0_38, %c0_39] : memref<1x128x32xf32, #tpu.memory_space<vmem>>, vector<1x128x32xf32>
    %73 = vector.shape_cast %72 : vector<1x128x32xf32> to vector<128x32xf32>
    %cst_40 = arith.constant dense<0.000000e+00> : vector<128x256xf32>
    %74 = tpu.matmul %73, %65, %cst_40 {dimension_numbers = #tpu.dot_dimension_numbers<[1], [0], [0], [1], [0, 0, 1, 1], [], []>} : vector<128x32xf32>, vector<32x256xf32>, vector<128x256xf32> -> vector<128x256xf32>
    %75 = vector.broadcast %70 : vector<128x1xf32> to vector<128x256xf32>
    %76 = arith.addf %75, %74 : vector<128x256xf32>
    %cst_41 = arith.constant dense<0x7F800000> : vector<256xf32>
    %77 = vector.multi_reduction <minimumf>, %76, %cst_41 [0] : vector<128x256xf32> to vector<256xf32>
    %78 = vector.shape_cast %77 : vector<256xf32> to vector<1x256xf32>
    %79 = tpu.iota {dimensions = array<i32: 0>} : vector<128x256xi32>
    %80 = arith.sitofp %79 : vector<128x256xi32> to vector<128x256xf32>
    %81 = vector.broadcast %78 : vector<1x256xf32> to vector<128x256xf32>
    %82 = arith.cmpf ole, %76, %81 : vector<128x256xf32>
    %cst_42 = arith.constant 1.280000e+02 : f32
    %83 = vector.broadcast %cst_42 : f32 to vector<128x256xf32>
    %84 = arith.select %82, %80, %83 : vector<128x256xi1>, vector<128x256xf32>
    %c128_i32_43 = arith.constant 128 : i32
    %85 = arith.muli %c0_i32_35, %c128_i32_43 : i32
    %86 = arith.sitofp %85 : i32 to f32
    %cst_44 = arith.constant dense<0x7F800000> : vector<256xf32>
    %87 = vector.multi_reduction <minimumf>, %84, %cst_44 [0] : vector<128x256xf32> to vector<256xf32>
    %88 = vector.shape_cast %87 : vector<256xf32> to vector<1x256xf32>
    %89 = vector.broadcast %86 : f32 to vector<1x256xf32>
    %90 = arith.addf %88, %89 : vector<1x256xf32>
    %91 = arith.cmpf olt, %78, %66 : vector<1x256xf32>
    %92 = arith.select %91, %78, %66 : vector<1x256xi1>, vector<1x256xf32>
    %93 = arith.select %91, %90, %67 : vector<1x256xi1>, vector<1x256xf32>
    %c1_i32_45 = arith.constant 1 : i32
    %cst_46 = arith.constant 0.000000e+00 : f32
    %94 = vector.broadcast %cst_46 : f32 to vector<32x256xf32>
    %c0_i32_47 = arith.constant 0 : i32
    %c128_i32_48 = arith.constant 128 : i32
    %95 = arith.muli %c0_i32_47, %c128_i32_48 : i32
    %96 = arith.sitofp %95 : i32 to f32
    %97 = tpu.iota {dimensions = array<i32: 0>} : vector<128x256xi32>
    %98 = arith.sitofp %97 : vector<128x256xi32> to vector<128x256xf32>
    %99 = vector.broadcast %96 : f32 to vector<128x256xf32>
    %100 = arith.addf %98, %99 : vector<128x256xf32>
    %101 = vector.broadcast %93 : vector<1x256xf32> to vector<128x256xf32>
    %102 = arith.cmpf oeq, %100, %101 : vector<128x256xf32>
    %103 = arith.extui %102 : vector<128x256xi1> to vector<128x256xi32>
    %104 = arith.sitofp %103 : vector<128x256xi32> to vector<128x256xf32>
    %105 = arith.index_cast %c0_i32_47 : i32 to index
    %c0_49 = arith.constant 0 : index
    %c0_50 = arith.constant 0 : index
    %106 = vector.load %arg4[%105, %c0_49, %c0_50] : memref<1x32x128xf32, #tpu.memory_space<vmem>>, vector<1x32x128xf32>
    %107 = vector.shape_cast %106 : vector<1x32x128xf32> to vector<32x128xf32>
    %cst_51 = arith.constant dense<0.000000e+00> : vector<32x256xf32>
    %108 = tpu.matmul %107, %104, %cst_51 {dimension_numbers = #tpu.dot_dimension_numbers<[1], [0], [0], [1], [0, 0, 1, 1], [], []>} : vector<32x128xf32>, vector<128x256xf32>, vector<32x256xf32> -> vector<32x256xf32>
    %109 = arith.addf %94, %108 : vector<32x256xf32>
    %110 = arith.index_cast %c0_i32_47 : i32 to index
    %c0_52 = arith.constant 0 : index
    %c0_53 = arith.constant 0 : index
    %111 = vector.load %arg5[%110, %c0_52, %c0_53] : memref<1x32x128xf32, #tpu.memory_space<vmem>>, vector<1x32x128xf32>
    %112 = vector.shape_cast %111 : vector<1x32x128xf32> to vector<32x128xf32>
    %cst_54 = arith.constant dense<0.000000e+00> : vector<32x256xf32>
    %113 = tpu.matmul %112, %104, %cst_54 {dimension_numbers = #tpu.dot_dimension_numbers<[1], [0], [0], [1], [0, 0, 1, 1], [], []>} : vector<32x128xf32>, vector<128x256xf32>, vector<32x256xf32> -> vector<32x256xf32>
    %114 = arith.addf %109, %113 : vector<32x256xf32>
    %c1_i32_55 = arith.constant 1 : i32
    %c1_56 = arith.constant 1 : index
    %c0_57 = arith.constant 0 : index
    %c0_58 = arith.constant 0 : index
    %115 = vector.load %arg7[%c1_56, %c0_57, %c0_58] : memref<2x32x256xf32, #tpu.memory_space<vmem>>, vector<1x32x256xf32>
    %116 = vector.shape_cast %115 : vector<1x32x256xf32> to vector<32x256xf32>
    %117 = vector.shape_cast %114 : vector<32x256xf32> to vector<1x32x256xf32>
    tpu.vector_store %arg7[%c1_56, %c0_57, %c0_58], %117 {strides = array<i32>} : memref<2x32x256xf32, #tpu.memory_space<vmem>>, vector<1x32x256xf32>,
    %118 = arith.subf %114, %65 : vector<32x256xf32>
    %c0_59 = arith.constant 0 : index
    %c0_60 = arith.constant 0 : index
    %119 = vector.load %arg9[%c0_59, %c0_60] : memref<1x256xf32, #tpu.memory_space<vmem>>, vector<1x256xf32>
    %120 = arith.mulf %118, %118 : vector<32x256xf32>
    %cst_61 = arith.constant dense<0.000000e+00> : vector<256xf32>
    %121 = vector.multi_reduction <add>, %120, %cst_61 [0] : vector<32x256xf32> to vector<256xf32>
    %122 = vector.shape_cast %121 : vector<256xf32> to vector<1x256xf32>
    %123 = arith.addf %119, %122 : vector<1x256xf32>
    %c0_62 = arith.constant 0 : index
    %c0_63 = arith.constant 0 : index
    %124 = vector.load %arg9[%c0_62, %c0_63] : memref<1x256xf32, #tpu.memory_space<vmem>>, vector<1x256xf32>
    tpu.vector_store %arg9[%c0_62, %c0_63], %123 {strides = array<i32>} : memref<1x256xf32, #tpu.memory_space<vmem>>, vector<1x256xf32>,
    %c0_i32_64 = arith.constant 0 : i32
    %125 = arith.cmpi eq, %arg1, %c0_i32_64 : i32
    %126 = arith.extui %125 : i1 to i32
    %c0_i32_65 = arith.constant 0 : i32
    %127 = arith.cmpi ne, %126, %c0_i32_65 : i32
    scf.if %127 {
      %c0_66 = arith.constant 0 : index
      %c0_67 = arith.constant 0 : index
      %128 = vector.load %arg9[%c0_66, %c0_67] : memref<1x256xf32, #tpu.memory_space<vmem>>, vector<1x256xf32>
      %cst_68 = arith.constant dense<0.000000e+00> : vector<1xf32>
      %129 = vector.multi_reduction <add>, %128, %cst_68 [1] : vector<1x256xf32> to vector<1xf32>
      %130 = vector.shape_cast %129 : vector<1xf32> to vector<1x1xf32>
      %c0_69 = arith.constant 0 : index
      %c0_70 = arith.constant 0 : index
      %c0_71 = arith.constant 0 : index
      %131 = vector.load %arg8[%c0_69, %c0_70, %c0_71] : memref<1x1x1xf32, #tpu.memory_space<vmem>>, vector<1x1x1xf32>
      %132 = vector.shape_cast %131 : vector<1x1x1xf32> to vector<1x1xf32>
      %133 = vector.shape_cast %130 : vector<1x1xf32> to vector<1x1x1xf32>
      tpu.vector_store %arg8[%c0_69, %c0_70, %c0_71], %133 {strides = array<i32>} : memref<1x1x1xf32, #tpu.memory_space<vmem>>, vector<1x1x1xf32>,
    } else {
    }
    return
  }
  func.func @transform_0(%arg0: i32, %arg1: i32) -> (i32, i32, i32) {
    %c0_i32 = arith.constant 0 : i32
    %c0_i32_0 = arith.constant 0 : i32
    return %arg0, %c0_i32, %arg1 : i32, i32, i32
  }
  func.func @transform_1(%arg0: i32, %arg1: i32) -> (i32, i32, i32) {
    %c0_i32 = arith.constant 0 : i32
    %c0_i32_0 = arith.constant 0 : i32
    %c0_i32_1 = arith.constant 0 : i32
    %c0_i32_2 = arith.constant 0 : i32
    return %c0_i32, %c0_i32_0, %c0_i32_1 : i32, i32, i32
  }
  func.func @transform_2(%arg0: i32, %arg1: i32) -> (i32, i32, i32) {
    %c0_i32 = arith.constant 0 : i32
    %c0_i32_0 = arith.constant 0 : i32
    %c0_i32_1 = arith.constant 0 : i32
    %c0_i32_2 = arith.constant 0 : i32
    return %c0_i32, %c0_i32_0, %c0_i32_1 : i32, i32, i32
  }
  func.func @transform_3(%arg0: i32, %arg1: i32) -> (i32, i32, i32) {
    %c0_i32 = arith.constant 0 : i32
    %c0_i32_0 = arith.constant 0 : i32
    %c0_i32_1 = arith.constant 0 : i32
    %c0_i32_2 = arith.constant 0 : i32
    return %c0_i32, %c0_i32_0, %c0_i32_1 : i32, i32, i32
  }
  func.func @transform_4(%arg0: i32, %arg1: i32) -> (i32, i32, i32) {
    %c0_i32 = arith.constant 0 : i32
    %c0_i32_0 = arith.constant 0 : i32
    %c0_i32_1 = arith.constant 0 : i32
    %c0_i32_2 = arith.constant 0 : i32
    return %c0_i32, %c0_i32_0, %c0_i32_1 : i32, i32, i32
  }
  func.func @transform_5(%arg0: i32, %arg1: i32) -> (i32, i32, i32) {
    %c0_i32 = arith.constant 0 : i32
    %c0_i32_0 = arith.constant 0 : i32
    return %arg0, %c0_i32, %arg1 : i32, i32, i32
  }
  func.func @transform_6(%arg0: i32, %arg1: i32) -> (i32, i32, i32) {
    %c0_i32 = arith.constant 0 : i32
    %c0_i32_0 = arith.constant 0 : i32
    %c0_i32_1 = arith.constant 0 : i32
    return %arg0, %c0_i32, %c0_i32_0 : i32, i32, i32
  }
}

</mosaic_0001>

<bundles_post_ra>
// kernel: tpu_custom_call.1
= control target key start
LH: loop header
LB: loop body
LE: loop exit
PB: predicated region body
PF: predicated region fallthrough
CT: control target
= control target key end

     0   :  { %12 = vsyncpa [#allocation4], 0  ;;  %v4075_v4 = vmov 0.0   ;;  %v2197_v6 = vmov 0   ;;  %vm73_vm0 = vcmask 261120   ;;  %s4067_s0 = inlined_call_operand.vmem [shape: f32[2,32,256], index: 0, kind: input, shape index: {}]   ;;  %s4068_s1 = inlined_call_operand.vmem [shape: f32[1,128,32], index: 1, kind: input, shape index: {}]   ;;  %s4069_s2 = inlined_call_operand.vmem [shape: f32[1,32,128], index: 2, kind: input, shape index: {}]   ;;  %s4070_s3 = inlined_call_operand.vmem [shape: f32[1,32,128], index: 3, kind: input, shape index: {}]   ;;  %s4071_s4 = inlined_call_operand.vmem [shape: f32[1,128,1], index: 4, kind: input, shape index: {}]   ;;  %s4072_s5 = inlined_call_operand.hbm [shape: f32[2,32,256], index: 5, kind: output, shape index: {0}]   ;;  %s4073_s6 = inlined_call_operand.hbm [shape: f32[1,1,1], index: 6, kind: output, shape index: {1}]  }
   0x1   :  { %v40_v0 = vld [vmem:[%s4067_s0 + $0x38] sm:$0xff]  ;;  %v39_v1 = vld [vmem:[%s4067_s0 + $0x30] sm:$0xff]  ;;  %v38_v2 = vld [vmem:[%s4067_s0 + $0x28] sm:$0xff]  ;;  %186 = vmatprep.mubr.f32.mxu0 %v4075_v4  ;;  %2135 = vset.pattern.permute.xlu1 %v2197_v6 }
   0x2   :  { %146 = vmatprep.subr.mxu0 %v40_v0  ;;  %v37_v3 = vld [vmem:[%s4067_s0 + $0x20] sm:$0xff]  ;;  %v36_v5 = vld [vmem:[%s4067_s0 + $0x18] sm:$0xff]  ;;  %v35_v7 = vld [vmem:[%s4067_s0 + $0x10] sm:$0xff]  ;;  %2134 = vset.pattern.permute.xlu0 %v2197_v6 }
   0x3   :  { %147 = vmatpush1.msra.mxu0 %v39_v1  ;;  %v34_v8 = vld [vmem:[%s4067_s0 + $0x8] sm:$0xff]  ;;  %766 = vmatprep.mubr.f32.mxu1 %v4075_v4  ;;  %v33_v9 = vld [vmem:[%s4067_s0] sm:$0xff]  ;;  %v1981_v11 = vld [vmem:[%s4067_s0 + $0x78] sm:$0xff] }
   0x4   :  { %148 = vmatprep.subr.mxu0 %v38_v2  ;;  %v2268_v10 = vld [vmem:[%s4068_s1] sm:$0xff]  ;;  %v1980_v12 = vld [vmem:[%s4067_s0 + $0x70] sm:$0xff]  ;;  %v1979_v13 = vld [vmem:[%s4067_s0 + $0x68] sm:$0xff] }
   0x5   :  { %149 = vmatpush1.msra.mxu0 %v37_v3  ;;  %v2282_v14 = vld [vmem:[%s4071_s4 + $0x10] sm:$0xff]  ;;  %v1978_v15 = vld [vmem:[%s4067_s0 + $0x60] sm:$0xff]  ;;  %v2298_v17 = vld [vmem:[%s4068_s1 + $0x8] sm:$0xff] }
   0x6   :  { %150 = vmatprep.subr.mxu0 %v36_v5  ;;  %v2292_v16 = vld [vmem:[%s4071_s4] sm:$0xff]  ;;  %v1977_v18 = vld [vmem:[%s4067_s0 + $0x58] sm:$0xff]  ;;  %v1976_v19 = vld [vmem:[%s4067_s0 + $0x50] sm:$0xff]  ;;  %295 = vperm.xlu1 %2135, %v2282_v14  }
   0x7   :  { %151 = vmatpush1.msra.mxu0 %v35_v7  ;;  %285 = vperm.xlu0 %2134, %v2292_v16   ;;  %v2311_v20 = vld [vmem:[%s4071_s4 + $0x18] sm:$0xff]  ;;  %v1975_v21 = vld [vmem:[%s4067_s0 + $0x48] sm:$0xff]  ;;  %v1974_v23 = vld [vmem:[%s4067_s0 + $0x40] sm:$0xff] }
   0x8   :  { %152 = vmatprep.subr.mxu0 %v34_v8  ;;  %v42_v22 = vld [vmem:[%s4071_s4 + $0x8] sm:$0xff]  ;;  %v2328_v24 = vld [vmem:[%s4068_s1 + $0x10] sm:$0xff] }
   0x9   :  { %153 = vmatpush1.msra.mxu0 %v33_v9  ;;  %v46_v25 = vld [vmem:[%s4071_s4 + $0x28] sm:$0xff] }
   0xa   :  { %1862 = vmatmul.mubr.msk.f32.vlgmr.msra.gmra.mxu0 %vm73_vm0, %v2268_v10  ;;  %1060 = vmatprep.subr.mxu0 %v1981_v11 }
   0xb   :  { %1061 = vmatpush1.msra.mxu0 %v1980_v12  ;;  %192 = vmatprep.mubr.f32.mxu0 %v4075_v4 }
   0xc   :  { %1062 = vmatprep.subr.mxu0 %v1979_v13  ;;  %300 = vperm.xlu1 %2135, %v2311_v20  }
   0xd   :  { %1063 = vmatpush1.msra.mxu0 %v1978_v15  ;;  %290 = vperm.xlu0 %2134, %v42_v22  }
   0xe   :  { %1863 = vmatmul.mubr.msk.f32.gmra.mxu0 %vm73_vm0, %v2298_v17  ;;  %1064 = vmatprep.subr.mxu0 %v1977_v18 }
   0xf   :  { %198 = vmatprep.mubr.f32.mxu0 %v4075_v4  ;;  %1065 = vmatpush1.msra.mxu0 %v1976_v19 }
  0x10   :  { %1066 = vmatprep.subr.mxu0 %v1975_v21 }
  0x11   :  { %1067 = vmatpush1.msra.mxu0 %v1974_v23 }
  0x12   :  { %13 = vsyncpa [#allocation6], 0  ;;  %1864 = vmatmul.mubr.msk.f32.gmra.mxu0 %vm73_vm0, %v2328_v24  ;;  %v45_v26 = vld [vmem:[%s4071_s4 + $0x20] sm:$0xff]  ;;  %v2343_v27 = vld [vmem:[%s4068_s1 + $0x18] sm:$0xff]  ;;  %310 = vperm.xlu1 %2135, %v46_v25  }
  0x13   :  { %204 = vmatprep.mubr.f32.mxu0 %v4075_v4  ;;  %305 = vperm.xlu0 %2134, %v45_v26   ;;  %v48_v28 = vld [vmem:[%s4071_s4 + $0x38] sm:$0xff]  ;;  %v47_v29 = vld [vmem:[%s4071_s4 + $0x30] sm:$0xff]  ;;  %v2357_v30 = vld [vmem:[%s4068_s1 + $0x20] sm:$0xff] }
  0x14   :  { %v50_v31 = vld [vmem:[%s4071_s4 + $0x48] sm:$0xff]  ;;  %v49_v32 = vld [vmem:[%s4071_s4 + $0x40] sm:$0xff]  ;;  %v52_v34 = vld [vmem:[%s4071_s4 + $0x58] sm:$0xff] }
  0x15   :  { %v2371_v33 = vld [vmem:[%s4068_s1 + $0x28] sm:$0xff]  ;;  %v51_v35 = vld [vmem:[%s4071_s4 + $0x50] sm:$0xff]  ;;  %v53_v38 = vld [vmem:[%s4071_s4 + $0x60] sm:$0xff] }
  0x16   :  { %1865 = vmatmul.mubr.msk.f32.gmra.mxu0 %vm73_vm0, %v2343_v27  ;;  %320 = vperm.xlu1 %2135, %v48_v28   ;;  %v2385_v36 = vld [vmem:[%s4068_s1 + $0x30] sm:$0xff]  ;;  %v54_v37 = vld [vmem:[%s4071_s4 + $0x68] sm:$0xff]  ;;  %v2399_v39 = vld [vmem:[%s4068_s1 + $0x38] sm:$0xff] }
  0x17   :  { %210 = vmatprep.mubr.f32.mxu0 %v4075_v4  ;;  %315 = vperm.xlu0 %2134, %v47_v29   ;;  %v56_v40 = vld [vmem:[%s4071_s4 + $0x78] sm:$0xff]  ;;  %v55_v41 = vld [vmem:[%s4071_s4 + $0x70] sm:$0xff]  ;;  %v65_v42 = vld [vmem:[%s4068_s1 + $0x40] sm:$0xff] }
  0x18   :  { %v66_v43 = vld [vmem:[%s4068_s1 + $0x48] sm:$0xff]  ;;  %v67_v44 = vld [vmem:[%s4068_s1 + $0x50] sm:$0xff]  ;;  %v68_v45 = vld [vmem:[%s4068_s1 + $0x58] sm:$0xff] }
  0x19   :  { %v69_v46 = vld [vmem:[%s4068_s1 + $0x60] sm:$0xff]  ;;  %v70_v47 = vld [vmem:[%s4068_s1 + $0x68] sm:$0xff]  ;;  %v71_v48 = vld [vmem:[%s4068_s1 + $0x70] sm:$0xff] }
  0x1a   :  { %1866 = vmatmul.mubr.msk.f32.gmra.mxu0 %vm73_vm0, %v2357_v30  ;;  %330 = vperm.xlu1 %2135, %v50_v31   ;;  %v72_v49 = vld [vmem:[%s4068_s1 + $0x78] sm:$0xff] }
  0x1b   :  { %216 = vmatprep.mubr.f32.mxu0 %v4075_v4  ;;  %325 = vperm.xlu0 %2134, %v49_v32  }
  0x1e   :  { %1867 = vmatmul.mubr.msk.f32.gmra.mxu0 %vm73_vm0, %v2371_v33  ;;  %340 = vperm.xlu1 %2135, %v52_v34  }
  0x1f   :  { %222 = vmatprep.mubr.f32.mxu0 %v4075_v4  ;;  %335 = vperm.xlu0 %2134, %v51_v35  }
  0x22   :  { %1868 = vmatmul.mubr.msk.f32.gmra.mxu0 %vm73_vm0, %v2385_v36  ;;  %350 = vperm.xlu1 %2135, %v54_v37  }
  0x23   :  { %228 = vmatprep.mubr.f32.mxu0 %v4075_v4  ;;  %345 = vperm.xlu0 %2134, %v53_v38  }
  0x26   :  { %1869 = vmatmul.mubr.msk.f32.gmra.mxu0 %vm73_vm0, %v2399_v39  ;;  %360 = vperm.xlu1 %2135, %v56_v40  }
  0x27   :  { %234 = vmatprep.mubr.f32.mxu0 %v4075_v4  ;;  %355 = vperm.xlu0 %2134, %v55_v41  }
  0x2a   :  { %1870 = vmatmul.mubr.msk.f32.gmra.mxu0 %vm73_vm0, %v65_v42  ;;  %1204 = vperm.xlu1 %2135, %v42_v22  }
  0x2b   :  { %240 = vmatprep.mubr.f32.mxu0 %v4075_v4  ;;  %1199 = vperm.xlu0 %2134, %v2292_v16  }
  0x2e   :  { %1871 = vmatmul.mubr.msk.f32.gmra.mxu0 %vm73_vm0, %v66_v43  ;;  %1214 = vperm.xlu1 %2135, %v2311_v20  }
  0x2f   :  { %246 = vmatprep.mubr.f32.mxu0 %v4075_v4  ;;  %1209 = vperm.xlu0 %2134, %v2282_v14  }
  0x32   :  { %1872 = vmatmul.mubr.msk.f32.gmra.mxu0 %vm73_vm0, %v67_v44  ;;  %1224 = vperm.xlu1 %2135, %v46_v25  }
  0x33   :  { %252 = vmatprep.mubr.f32.mxu0 %v4075_v4  ;;  %1219 = vperm.xlu0 %2134, %v45_v26  }
  0x36   :  { %1873 = vmatmul.mubr.msk.f32.gmra.mxu0 %vm73_vm0, %v68_v45  ;;  %1234 = vperm.xlu1 %2135, %v48_v28  }
  0x37   :  { %258 = vmatprep.mubr.f32.mxu0 %v4075_v4  ;;  %1229 = vperm.xlu0 %2134, %v47_v29  }
  0x3a   :  { %1874 = vmatmul.mubr.msk.f32.gmra.mxu0 %vm73_vm0, %v69_v46  ;;  %1244 = vperm.xlu1 %2135, %v50_v31  }
  0x3b   :  { %264 = vmatprep.mubr.f32.mxu0 %v4075_v4  ;;  %1239 = vperm.xlu0 %2134, %v49_v32  }
  0x3e   :  { %1875 = vmatmul.mubr.msk.f32.gmra.mxu0 %vm73_vm0, %v70_v47  ;;  %1254 = vperm.xlu1 %2135, %v52_v34  }
  0x3f   :  { %270 = vmatprep.mubr.f32.mxu0 %v4075_v4  ;;  %1249 = vperm.xlu0 %2134, %v51_v35  }
  0x42   :  { %1876 = vmatmul.mubr.msk.f32.gmra.mxu0 %vm73_vm0, %v71_v48  ;;  %1264 = vperm.xlu1 %2135, %v54_v37  }
  0x43   :  { %276 = vmatprep.mubr.f32.mxu0 %v4075_v4  ;;  %1259 = vperm.xlu0 %2134, %v53_v38  }
  0x46   :  { %1877 = vmatmul.mubr.msk.f32.gmra.mxu0 %vm73_vm0, %v72_v49  ;;  %1274 = vperm.xlu1 %2135, %v56_v40  }
  0x47   :  { %1100 = vmatprep.mubr.f32.mxu0 %v4075_v4  ;;  %1269 = vperm.xlu0 %2134, %v55_v41  }
  0x4a   :  { %1982 = vmatmul.mubr.msk.f32.vlgmr.msra.gmra.mxu0 %vm73_vm0, %v2268_v10 }
  0x4b   :  { %1106 = vmatprep.mubr.f32.mxu0 %v4075_v4 }
  0x4e   :  { %1983 = vmatmul.mubr.msk.f32.gmra.mxu0 %vm73_vm0, %v2298_v17 }
  0x4f   :  { %1112 = vmatprep.mubr.f32.mxu0 %v4075_v4 }
  0x52   :  { %1984 = vmatmul.mubr.msk.f32.gmra.mxu0 %vm73_vm0, %v2328_v24 }
  0x53   :  { %1118 = vmatprep.mubr.f32.mxu0 %v4075_v4 }
  0x56   :  { %1985 = vmatmul.mubr.msk.f32.gmra.mxu0 %vm73_vm0, %v2343_v27 }
  0x57   :  { %1124 = vmatprep.mubr.f32.mxu0 %v4075_v4 }
  0x5a   :  { %1986 = vmatmul.mubr.msk.f32.gmra.mxu0 %vm73_vm0, %v2357_v30 }
  0x5b   :  { %1130 = vmatprep.mubr.f32.mxu0 %v4075_v4 }
  0x5e   :  { %1987 = vmatmul.mubr.msk.f32.gmra.mxu0 %vm73_vm0, %v2371_v33 }
  0x5f   :  { %1136 = vmatprep.mubr.f32.mxu0 %v4075_v4 }
  0x62   :  { %1988 = vmatmul.mubr.msk.f32.gmra.mxu0 %vm73_vm0, %v2385_v36 }
  0x63   :  { %1142 = vmatprep.mubr.f32.mxu0 %v4075_v4 }
  0x66   :  { %1989 = vmatmul.mubr.msk.f32.gmra.mxu0 %vm73_vm0, %v2399_v39 }
  0x67   :  { %1148 = vmatprep.mubr.f32.mxu0 %v4075_v4 }
  0x6a   :  { %1990 = vmatmul.mubr.msk.f32.gmra.mxu0 %vm73_vm0, %v65_v42 }
  0x6b   :  { %1154 = vmatprep.mubr.f32.mxu0 %v4075_v4 }
  0x6e   :  { %1991 = vmatmul.mubr.msk.f32.gmra.mxu0 %vm73_vm0, %v66_v43 }
  0x6f   :  { %1160 = vmatprep.mubr.f32.mxu0 %v4075_v4 }
  0x72   :  { %1992 = vmatmul.mubr.msk.f32.gmra.mxu0 %vm73_vm0, %v67_v44 }
  0x73   :  { %1166 = vmatprep.mubr.f32.mxu0 %v4075_v4 }
  0x76   :  { %1993 = vmatmul.mubr.msk.f32.gmra.mxu0 %vm73_vm0, %v68_v45 }
  0x77   :  { %1172 = vmatprep.mubr.f32.mxu0 %v4075_v4 }
  0x7a   :  { %1994 = vmatmul.mubr.msk.f32.gmra.mxu0 %vm73_vm0, %v69_v46 }
  0x7b   :  { %1178 = vmatprep.mubr.f32.mxu0 %v4075_v4 }
  0x7e   :  { %1995 = vmatmul.mubr.msk.f32.gmra.mxu0 %vm73_vm0, %v70_v47 }
  0x7f   :  { %1184 = vmatprep.mubr.f32.mxu0 %v4075_v4 }
  0x81   :  { %v296_v60 = vpop.permute.xlu1 %295 }
  0x82   :  { %1996 = vmatmul.mubr.msk.f32.gmra.mxu0 %vm73_vm0, %v71_v48  ;;  %v286_v58 = vpop.permute.xlu0 %285 }
  0x83   :  { %1190 = vmatprep.mubr.f32.mxu0 %v4075_v4 }
  0x86   :  { %1997 = vmatmul.mubr.msk.f32.gmra.mxu0 %vm73_vm0, %v72_v49 }
  0x87   :  { %1720 = vmatprep.mubr.f32.mxu0 %v4075_v4  ;;  %v301_v1 = vpop.permute.xlu1 %300 }
  0x88   :  { %v291_v63 = vpop.permute.xlu0 %290 }
  0x8d   :  { %v311_v7 = vpop.permute.xlu1 %310 }
  0x8e   :  { %v306_v5 = vpop.permute.xlu0 %305 }
  0x91   :  { %v321_v12 = vpop.permute.xlu1 %320 }
  0x92   :  { %v316_v10 = vpop.permute.xlu0 %315 }
  0x95   :  { %v331_v17 = vpop.permute.xlu1 %330 }
  0x96   :  { %v326_v15 = vpop.permute.xlu0 %325 }
  0x99   :  { %v341_v24 = vpop.permute.xlu1 %340 }
  0x9a   :  { %v336_v20 = vpop.permute.xlu0 %335 }
  0x9e   :  { %v346_v41 = vpop.permute.xlu0 %345 }
  0xca   :  { %v188_v50 = vpop.f32.mrf.mxu0 }
  0xcb   :  { %v2501_v28 = vadd.f32 %v286_v58, %v188_v50 }
  0xcc   :  { %v190_v51 = vpop.f32.mrf.mxu0 }
  0xcd   :  { %v2509_v32 = vadd.f32 %v286_v58, %v190_v51  ;;  %v351_v51 = vpop.permute.xlu1 %350 }
  0xce   :  { %v194_v52 = vpop.f32.mrf.mxu0 }
  0xcf   :  { %v2503_v29 = vadd.f32 %v291_v63, %v194_v52 }
  0xd0   :  { %v196_v53 = vpop.f32.mrf.mxu0 }
  0xd1   :  { %v2511_v33 = vadd.f32 %v291_v63, %v196_v53 }
  0xd2   :  { %v200_v54 = vpop.f32.mrf.mxu0 }
  0xd3   :  { %v2493_v22 = vadd.f32 %v296_v60, %v200_v54 }
  0xd4   :  { %v202_v55 = vpop.f32.mrf.mxu0 }
  0xd5   :  { %v2497_v25 = vadd.f32 %v296_v60, %v202_v55  ;;  %v395_v37 = vmin.f32 %v2501_v28, %v2493_v22 }
  0xd6   :  { %v206_v56 = vpop.f32.mrf.mxu0 }
  0xd7   :  { %v2495_v23 = vadd.f32 %v301_v1, %v206_v56  ;;  %v416_v42 = vmin.f32 %v2509_v32, %v2497_v25 }
  0xd8   :  { %v208_v57 = vpop.f32.mrf.mxu0 }
  0xd9   :  { %v2499_v26 = vadd.f32 %v301_v1, %v208_v57  ;;  %v396_v38 = vmin.f32 %v2503_v29, %v2495_v23 }
  0xda   :  { %v212_v59 = vpop.f32.mrf.mxu0 }
  0xdb   :  { %v2505_v30 = vadd.f32 %v306_v5, %v212_v59  ;;  %v417_v43 = vmin.f32 %v2511_v33, %v2499_v26 }
  0xdc   :  { %v214_v61 = vpop.f32.mrf.mxu0 }
  0xdd   :  { %v2513_v34 = vadd.f32 %v306_v5, %v214_v61  ;;  %v397_v47 = vmin.f32 %v395_v37, %v2505_v30 }
  0xde   :  { %v218_v62 = vpop.f32.mrf.mxu0 }
  0xdf   :  { %v2507_v31 = vadd.f32 %v311_v7, %v218_v62  ;;  %v418_v52 = vmin.f32 %v416_v42, %v2513_v34 }
  0xe0   :  { %v220_v0 = vpop.f32.mrf.mxu0 }
  0xe1   :  { %v2515_v35 = vadd.f32 %v311_v7, %v220_v0  ;;  %v398_v48 = vmin.f32 %v396_v38, %v2507_v31  ;;  %v356_v7 = vpop.permute.xlu0 %355 }
  0xe2   :  { %v224_v2 = vpop.f32.mrf.mxu0 }
  0xe3   :  { %v2521_v39 = vadd.f32 %v316_v10, %v224_v2  ;;  %v419_v53 = vmin.f32 %v417_v43, %v2515_v35 }
  0xe4   :  { %v226_v3 = vpop.f32.mrf.mxu0 }
  0xe5   :  { %v2529_v44 = vadd.f32 %v316_v10, %v226_v3  ;;  %v399_v57 = vmin.f32 %v397_v47, %v2521_v39 }
  0xe6   :  { %v230_v6 = vpop.f32.mrf.mxu0 }
  0xe7   :  { %v2523_v40 = vadd.f32 %v321_v12, %v230_v6  ;;  %v420_v61 = vmin.f32 %v418_v52, %v2529_v44 }
  0xe8   :  { %v232_v8 = vpop.f32.mrf.mxu0 }
  0xe9   :  { %v2531_v45 = vadd.f32 %v321_v12, %v232_v8  ;;  %v400_v58 = vmin.f32 %v398_v48, %v2523_v40 }
  0xea   :  { %v236_v9 = vpop.f32.mrf.mxu0 }
  0xeb   :  { %v2535_v49 = vadd.f32 %v326_v15, %v236_v9  ;;  %v421_v62 = vmin.f32 %v419_v53, %v2531_v45 }
  0xec   :  { %v238_v11 = vpop.f32.mrf.mxu0 }
  0xed   :  { %v2541_v54 = vadd.f32 %v326_v15, %v238_v11  ;;  %v401_v2 = vmin.f32 %v399_v57, %v2535_v49  ;;  %v4074_v57 = vlaneseq }
  0xee   :  { %v242_v13 = vpop.f32.mrf.mxu0 }
  0xef   :  { %v2537_v50 = vadd.f32 %v331_v17, %v242_v13  ;;  %v422_v8 = vmin.f32 %v420_v61, %v2541_v54 }
  0xf0   :  { %v244_v14 = vpop.f32.mrf.mxu0 }
  0xf1   :  { %v2543_v55 = vadd.f32 %v331_v17, %v244_v14  ;;  %v402_v3 = vmin.f32 %v400_v58, %v2537_v50 }
  0xf2   :  { %v248_v16 = vpop.f32.mrf.mxu0 }
  0xf3   :  { %v2547_v59 = vadd.f32 %v336_v20, %v248_v16  ;;  %v423_v9 = vmin.f32 %v421_v62, %v2543_v55  ;;  %v361_v16 = vpop.permute.xlu1 %360 }
  0xf4   :  { %v250_v18 = vpop.f32.mrf.mxu0 }
  0xf5   :  { %v2553_v63 = vadd.f32 %v336_v20, %v250_v18  ;;  %v403_v12 = vmin.f32 %v401_v2, %v2547_v59 }
  0xf6   :  { %v254_v19 = vpop.f32.mrf.mxu0 }
  0xf7   :  { %v2549_v60 = vadd.f32 %v341_v24, %v254_v19  ;;  %v424_v17 = vmin.f32 %v422_v8, %v2553_v63 }
  0xf8   :  { %v256_v21 = vpop.f32.mrf.mxu0 }
  0xf9   :  { %v2555_v0 = vadd.f32 %v341_v24, %v256_v21  ;;  %v404_v13 = vmin.f32 %v402_v3, %v2549_v60  ;;  %v2598_v3 = vshrl.u32 %v4074_v57, 7 }
  0xfa   :  { %v260_v27 = vpop.f32.mrf.mxu0 }
  0xfb   :  { %v2559_v5 = vadd.f32 %v346_v41, %v260_v27  ;;  %v425_v18 = vmin.f32 %v423_v9, %v2555_v0  ;;  %4136 = vst [vmem:[#allocation11_spill] sm:$0xff] %v2598_v3 }
  0xfc   :  { %v262_v36 = vpop.f32.mrf.mxu0 }
  0xfd   :  { %v2565_v10 = vadd.f32 %v346_v41, %v262_v36  ;;  %v405_v20 = vmin.f32 %v403_v12, %v2559_v5 }
  0xfe   :  { %v266_v46 = vpop.f32.mrf.mxu0 }
  0xff   :  { %v2561_v6 = vadd.f32 %v351_v51, %v266_v46  ;;  %v426_v36 = vmin.f32 %v424_v17, %v2565_v10  ;;  %v441_v17 = vadd.s32 24, %v2598_v3 }
 0x100   :  { %v268_v56 = vpop.f32.mrf.mxu0 }
 0x101   :  { %v2569_v14 = vadd.f32 %v351_v51, %v268_v56  ;;  %v406_v21 = vmin.f32 %v404_v13, %v2561_v6  ;;  %v439_v13 = vadd.s32 8, %v2598_v3 }
 0x102   :  { %v272_v1 = vpop.f32.mrf.mxu0 }
 0x103   :  { %v2571_v15 = vadd.f32 %v356_v7, %v272_v1  ;;  %v427_v38 = vmin.f32 %v425_v18, %v2569_v14 }
 0x104   :  { %v274_v11 = vpop.f32.mrf.mxu0 }
 0x105   :  { %v2577_v24 = vadd.f32 %v356_v7, %v274_v11  ;;  %v407_v41 = vmin.f32 %v405_v20, %v2571_v15 }
 0x106   :  { %v278_v19 = vpop.f32.mrf.mxu0 }
 0x107   :  { %v2579_v27 = vadd.f32 %v361_v16, %v278_v19  ;;  %v428_v47 = vmin.f32 %v426_v36, %v2577_v24  ;;  %v443_v36 = vadd.s32 40, %v2598_v3 }
 0x108   :  { %v280_v37 = vpop.f32.mrf.mxu0 }
 0x109   :  { %v408_v42 = vmin.f32 %v406_v21, %v2579_v27  ;;  %v2585_v43 = vadd.f32 %v361_v16, %v280_v37  ;;  %v440_v16 = vadd.s32 16, %v2598_v3  ;;  %v442_v21 = vadd.s32 32, %v2598_v3 }
 0x10a   :  { %v2587_v46 = vpop.f32.mrf.mxu0  ;;  %v444_v37 = vadd.s32 48, %v2598_v3 }
 0x10b   :  { %v409_v48 = vmin.f32 %v407_v41, %v408_v42  ;;  %v429_v51 = vmin.f32 %v427_v38, %v2585_v43  ;;  %v445_v38 = vadd.s32 56, %v2598_v3  ;;  %v446_v41 = vadd.s32 64, %v2598_v3 }
 0x10c   :  { %v2591_v52 = vpop.f32.mrf.mxu0  ;;  %v2650_v57 = vcvt.s32.f32 %v442_v21 }
 0x10d   :  { %v410_v53 = vrot.slane %v409_v48, 4  ;;  %v430_v56 = vmin.f32 %v428_v47, %v429_v51  ;;  %v447_v47 = vadd.s32 72, %v2598_v3  ;;  %v449_v51 = vadd.s32 88, %v2598_v3 }
 0x10e   :  { %v2593_v58 = vpop.f32.mrf.mxu0  ;;  %v2656_v4 = vcvt.s32.f32 %v445_v38 }
 0x10f   :  { %4134 = vst [vmem:[#allocation9_spill] sm:$0xff] %v2593_v58  ;;  %v411_v61 = vmin.f32 %v409_v48, %v410_v53  ;;  %v431_v62 = vrot.slane %v430_v56, 4  ;;  %v448_v48 = vadd.s32 80, %v2598_v3  ;;  %v2622_v53 = vcvt.s32.f32 %v2598_v3 }
 0x110   :  { %v2595_v1 = vpop.f32.mrf.mxu0  ;;  %v2674_v38 = vcvt.s32.f32 %v449_v51 }
 0x111   :  { %4135 = vst [vmem:[#allocation10_spill] sm:$0xff] %v2595_v1  ;;  %v412_v2 = vrot.slane %v411_v61, 2  ;;  %v432_v7 = vmin.f32 %v430_v56, %v431_v62  ;;  %v2624_v56 = vcvt.s32.f32 %v439_v13  ;;  %v2628_v62 = vcvt.s32.f32 %v441_v17  ;;  %v2642_v13 = vpop.permute.xlu1 %1204 }
 0x112   :  { %v2600_v8 = vpop.f32.mrf.mxu0  ;;  %4140 = vst [vmem:[#allocation15_spill] sm:$0xff] %v2642_v13  ;;  %v452_v17 = vadd.s32 112, %v2598_v3 }
 0x113   :  { %v413_v9 = vmin.f32 %v411_v61, %v412_v2  ;;  %v433_v18 = vrot.slane %v432_v7, 2  ;;  %v2626_v61 = vcvt.s32.f32 %v440_v16  ;;  %v451_v16 = vadd.s32 104, %v2598_v3 }
 0x114   :  { %v2602_v11 = vpop.f32.mrf.mxu0 }
 0x115   :  { %v414_v12 = vrot.slane %v413_v9, 1  ;;  %v434_v2 = vmin.f32 %v432_v7, %v433_v18  ;;  %v450_v7 = vadd.s32 96, %v2598_v3  ;;  %v453_v18 = vadd.s32 120, %v2598_v3 }
 0x116   :  { %v2607_v19 = vpop.f32.mrf.mxu0  ;;  %v2664_v3 = vcvt.s32.f32 %v446_v41 }
 0x117   :  { %4137 = vst [vmem:[#allocation12_spill] sm:$0xff] %v2607_v19  ;;  %v2609_v20 = vmin.f32 %v413_v9, %v414_v12  ;;  %v2632_v12 = vpop.permute.xlu0 %1199  ;;  %v435_v21 = vrot.slane %v434_v2, 1 }
 0x118   :  { %v2616_v42 = vpop.f32.mrf.mxu0 }
 0x119   :  { %4138 = vst [vmem:[#allocation13_spill] sm:$0xff] %v2616_v42  ;;  %vm470_vm1 = vcmp.le.f32.partialorder %v2501_v28, %v2609_v20  ;;  %vm472_vm2 = vcmp.le.f32.partialorder %v2503_v29, %v2609_v20  ;;  %vm474_vm3 = vcmp.le.f32.partialorder %v2493_v22, %v2609_v20  ;;  %vm476_vm4 = vcmp.le.f32.partialorder %v2495_v23, %v2609_v20 }
 0x11a   :  { %v2630_v9 = vpop.f32.mrf.mxu0  ;;  %v2652_v29 = vcvt.s32.f32 %v443_v36  ;;  %v2654_v22 = vcvt.s32.f32 %v444_v37  ;;  %v502_v23 = vsel %vm470_vm1, %v2622_v53, 128.0  ;;  %v504_v1 = vsel %vm472_vm2, %v2624_v56, 128.0 }
 0x11b   :  { %4139 = vst [vmem:[#allocation14_spill] sm:$0xff] %v2630_v9  ;;  %v506_v13 = vsel %vm474_vm3, %v2626_v61, 128.0  ;;  %v508_v58 = vsel %vm476_vm4, %v2628_v62, 128.0  ;;  %vm478_vm5 = vcmp.le.f32.partialorder %v2505_v30, %v2609_v20  ;;  %vm480_vm6 = vcmp.le.f32.partialorder %v2507_v31, %v2609_v20 }
 0x11c   :  { %v2648_v28 = vpop.f32.mrf.mxu0  ;;  %v2670_v36 = vcvt.s32.f32 %v447_v47  ;;  %v2672_v37 = vcvt.s32.f32 %v448_v48  ;;  %vm482_vm7 = vcmp.le.f32.partialorder %v2521_v39, %v2609_v20  ;;  %vm484_vm8 = vcmp.le.f32.partialorder %v2523_v40, %v2609_v20  ;;  %v2686_v47 = vpop.permute.xlu1 %1214 }
 0x11d   :  { %4141 = vst [vmem:[#allocation16_spill] sm:$0xff] %v2648_v28  ;;  %v2676_v28 = vcvt.s32.f32 %v450_v7  ;;  %v534_v41 = vmin.f32 %v502_v23, %v506_v13  ;;  %v535_v19 = vmin.f32 %v504_v1, %v508_v58  ;;  %v2688_v48 = vcvt.s32.f32 %v451_v16 }
 0x11e   :  { %v2662_v9 = vpop.f32.mrf.mxu0  ;;  %vm486_vm9 = vcmp.le.f32.partialorder %v2535_v49, %v2609_v20  ;;  %v510_v51 = vsel %vm478_vm5, %v2650_v57, 128.0  ;;  %v512_v7 = vsel %vm480_vm6, %v2652_v29, 128.0  ;;  %vm488_vm10 = vcmp.le.f32.partialorder %v2537_v50, %v2609_v20 }
 0x11f   :  { %4142 = vst [vmem:[#allocation17_spill] sm:$0xff] %v2662_v9  ;;  %v2680_v9 = vpop.permute.xlu0 %1209  ;;  %v536_v58 = vmin.f32 %v534_v41, %v510_v51  ;;  %v537_v1 = vmin.f32 %v535_v19, %v512_v7  ;;  %v2704_v13 = vmin.f32 %v434_v2, %v435_v21  ;;  %v2706_v16 = vcvt.s32.f32 %v452_v17 }
 0x120   :  { %v2678_v42 = vpop.f32.mrf.mxu0  ;;  %v2708_v23 = vcvt.s32.f32 %v453_v18  ;;  %v514_v30 = vsel %vm482_vm7, %v2654_v22, 128.0  ;;  %v516_v31 = vsel %vm484_vm8, %v2656_v4, 128.0  ;;  %vm490_vm11 = vcmp.le.f32.partialorder %v2547_v59, %v2609_v20  ;;  %v2744_v21 = vpop.permute.xlu1 %1224 }
 0x121   :  { %4143 = vst [vmem:[#allocation18_spill] sm:$0xff] %v2678_v42  ;;  %vm492_vm12 = vcmp.le.f32.partialorder %v2549_v60, %v2609_v20  ;;  %v538_v19 = vmin.f32 %v536_v58, %v514_v30  ;;  %v539_v2 = vmin.f32 %v537_v1, %v516_v31  ;;  %vm494_vm13 = vcmp.le.f32.partialorder %v2559_v5, %v2609_v20 }
 0x122   :  { %v2700_v42 = vpop.f32.mrf.mxu0  ;;  %vm496_vm14 = vcmp.le.f32.partialorder %v2561_v6, %v2609_v20  ;;  %v518_v39 = vsel %vm486_vm9, %v2664_v3, 128.0  ;;  %v520_v40 = vsel %vm488_vm10, %v2670_v36, 128.0  ;;  %vm471_vm15 = vcmp.le.f32.partialorder %v2509_v32, %v2704_v13 }
 0x123   :  { %4144 = vst [vmem:[#allocation19_spill] sm:$0xff] %v2700_v42  ;;  %v2738_v60 = vpop.permute.xlu0 %1219  ;;  %v540_v17 = vmin.f32 %v538_v19, %v518_v39  ;;  %v541_v18 = vmin.f32 %v539_v2, %v520_v40  ;;  %vm473_vm0 = vcmp.le.f32.partialorder %v2511_v33, %v2704_v13  ;;  %v522_v49 = vsel %vm490_vm11, %v2672_v37, 128.0 }
 0x124   :  { %v2718_v42 = vpop.f32.mrf.mxu0  ;;  %v524_v41 = vsel %vm492_vm12, %v2674_v38, 128.0  ;;  %vm475_vm1 = vcmp.le.f32.partialorder %v2497_v25, %v2704_v13  ;;  %vm477_vm2 = vcmp.le.f32.partialorder %v2499_v26, %v2704_v13  ;;  %vm498_vm3 = vcmp.le.f32.partialorder %v2571_v15, %v2609_v20  ;;  %v2782_v40 = vpop.permute.xlu1 %1234 }
 0x125   :  { %vm500_vm4 = vcmp.le.f32.partialorder %v2579_v27, %v2609_v20  ;;  %v542_v32 = vmin.f32 %v540_v17, %v522_v49  ;;  %v543_v33 = vmin.f32 %v541_v18, %v524_v41  ;;  %v526_v51 = vsel %vm494_vm13, %v2676_v28, 128.0 }
 0x126   :  { %v2736_v59 = vpop.f32.mrf.mxu0  ;;  %v528_v25 = vsel %vm496_vm14, %v2688_v48, 128.0  ;;  %v503_v26 = vsel %vm471_vm15, %v2622_v53, 128.0  ;;  %v505_v7 = vsel %vm473_vm0, %v2624_v56, 128.0  ;;  %v507_v1 = vsel %vm475_vm1, %v2626_v61, 128.0 }
 0x127   :  { %v544_v58 = vmin.f32 %v542_v32, %v526_v51  ;;  %v545_v27 = vmin.f32 %v543_v33, %v528_v25  ;;  %v509_v30 = vsel %vm477_vm2, %v2628_v62, 128.0  ;;  %v530_v5 = vsel %vm498_vm3, %v2706_v16, 128.0  ;;  %v2780_v19 = vpop.permute.xlu0 %1229 }
 0x128   :  { %v2752_v50 = vpop.f32.mrf.mxu0  ;;  %v532_v31 = vsel %vm500_vm4, %v2708_v23, 128.0  ;;  %vm479_vm5 = vcmp.le.f32.partialorder %v2513_v34, %v2704_v13  ;;  %vm481_vm6 = vcmp.le.f32.partialorder %v2515_v35, %v2704_v13  ;;  %vm483_vm7 = vcmp.le.f32.partialorder %v2529_v44, %v2704_v13 }
 0x129   :  { %v546_v2 = vmin.f32 %v544_v58, %v530_v5  ;;  %v547_v39 = vmin.f32 %v545_v27, %v532_v31  ;;  %vm485_vm8 = vcmp.le.f32.partialorder %v2531_v45, %v2704_v13  ;;  %v555_v17 = vmin.f32 %v503_v26, %v507_v1  ;;  %v2810_v1 = vpop.permute.xlu1 %1244 }
 0x12a   :  { %v2768_v15 = vpop.f32.mrf.mxu0  ;;  %v556_v18 = vmin.f32 %v505_v7, %v509_v30  ;;  %v511_v35 = vsel %vm479_vm5, %v2650_v57, 128.0  ;;  %v513_v41 = vsel %vm481_vm6, %v2652_v29, 128.0  ;;  %vm487_vm9 = vcmp.le.f32.partialorder %v2541_v54, %v2704_v13 }
 0x12b   :  { %v548_v49 = vmin.f32 %v546_v2, %v547_v39  ;;  %vm489_vm10 = vcmp.le.f32.partialorder %v2543_v55, %v2704_v13  ;;  %v557_v32 = vmin.f32 %v555_v17, %v511_v35  ;;  %v515_v51 = vsel %vm483_vm7, %v2654_v22, 128.0  ;;  %v2806_v55 = vpop.permute.xlu0 %1239 }
 0x12c   :  { %v2778_v6 = vpop.f32.mrf.mxu0  ;;  %v558_v44 = vmin.f32 %v556_v18, %v513_v41  ;;  %v517_v25 = vsel %vm485_vm8, %v2656_v4, 128.0  ;;  %vm491_vm11 = vcmp.le.f32.partialorder %v2553_v63, %v2704_v13  ;;  %vm493_vm12 = vcmp.le.f32.partialorder %v2555_v0, %v2704_v13 }
 0x12d   :  { %v549_v45 = vrot.slane %v548_v49, 4  ;;  %v559_v26 = vmin.f32 %v557_v32, %v515_v51  ;;  %v519_v58 = vsel %vm487_vm9, %v2664_v3, 128.0  ;;  %v521_v27 = vsel %vm489_vm10, %v2670_v36, 128.0 }
 0x12e   :  { %v2788_v34 = vpop.f32.mrf.mxu0  ;;  %v560_v54 = vmin.f32 %v558_v44, %v517_v25  ;;  %vm495_vm13 = vcmp.le.f32.partialorder %v2565_v10, %v2704_v13  ;;  %vm497_vm14 = vcmp.le.f32.partialorder %v2569_v14, %v2704_v13  ;;  %v523_v31 = vsel %vm491_vm11, %v2672_v37, 128.0 }
 0x12f   :  { %v561_v63 = vmin.f32 %v559_v26, %v519_v58  ;;  %v550_v5 = vmin.f32 %v548_v49, %v549_v45  ;;  %v525_v2 = vsel %vm493_vm12, %v2674_v38, 128.0  ;;  %vm499_vm15 = vcmp.le.f32.partialorder %v2577_v24, %v2704_v13  ;;  %v1250_v25 = vpop.permute.xlu0 %1249  ;;  %v4148_v58 = vld [vmem:[#allocation13_spill] sm:$0xff] }
 0x130   :  { %v2796_v33 = vpop.f32.mrf.mxu0  ;;  %v562_v0 = vmin.f32 %v560_v54, %v521_v27  ;;  %vm501_vm0 = vcmp.le.f32.partialorder %v2585_v43, %v2704_v13  ;;  %v527_v14 = vsel %vm495_vm13, %v2676_v28, 128.0  ;;  %v529_v18 = vsel %vm497_vm14, %v2688_v48, 128.0  ;;  %v4147_v54 = vld [vmem:[#allocation12_spill] sm:$0xff] }
 0x131   :  { %v563_v39 = vmin.f32 %v561_v63, %v523_v31  ;;  %v2828_v49 = vadd.f32 %v2632_v12, %v2587_v46  ;;  %v2832_v35 = vadd.f32 %v2680_v9, %v2600_v8  ;;  %v2836_v44 = vadd.f32 %v2632_v12, %v2591_v52  ;;  %v1255_v12 = vpop.permute.xlu1 %1254  ;;  %v4150_v63 = vld [vmem:[#allocation14_spill] sm:$0xff]  ;;  %v4151_v31 = vld [vmem:[#allocation9_spill] sm:$0xff] }
 0x132   :  { %v2804_v7 = vpop.f32.mrf.mxu0  ;;  %v564_v10 = vmin.f32 %v562_v0, %v525_v2  ;;  %v2840_v45 = vadd.f32 %v2680_v9, %v2602_v11  ;;  %v551_v26 = vrot.slane %v550_v5, 2  ;;  %v531_v46 = vsel %vm499_vm15, %v2706_v16, 128.0  ;;  %v4152_v2 = vld [vmem:[#allocation15_spill] sm:$0xff] }
 0x133   :  { %v565_v41 = vmin.f32 %v563_v39, %v527_v14  ;;  %4145 = vst [vmem:[#allocation20_spill] sm:$0xff] %v2836_v44  ;;  %v533_v8 = vsel %vm501_vm0, %v2708_v23, 128.0  ;;  %v2852_v52 = vadd.f32 %v2686_v47, %v4147_v54  ;;  %v2856_v27 = vadd.f32 %v2686_v47, %v4148_v58  ;;  %v4153_v39 = vld [vmem:[#allocation10_spill] sm:$0xff]  ;;  %v4159_v58 = vld [vmem:[#allocation19_spill] sm:$0xff] }
 0x134   :  { %v2816_v30 = vpop.f32.mrf.mxu0  ;;  %v566_v32 = vmin.f32 %v564_v10, %v529_v18  ;;  %4146 = vst [vmem:[#allocation21_spill] sm:$0xff] %v2840_v45  ;;  %v2860_v24 = vadd.f32 %v2738_v60, %v4150_v63  ;;  %v2864_v43 = vadd.f32 %v4152_v2, %v4151_v31  ;;  %v2868_v10 = vadd.f32 %v4152_v2, %v4153_v39  ;;  %v4155_v18 = vld [vmem:[#allocation17_spill] sm:$0xff] }
 0x135   :  { %v567_v11 = vmin.f32 %v565_v41, %v531_v46  ;;  %4149 = vst [vmem:[#allocation12_spill] sm:$0xff] %v2856_v27  ;;  %v1309_v14 = vmin.f32 %v2828_v49, %v2832_v35  ;;  %v2874_v47 = vadd.f32 %v2744_v21, %v4155_v18  ;;  %v2886_v63 = vadd.f32 %v2780_v19, %v4159_v58 }
 0x136   :  { %v1168_v17 = vpop.f32.mrf.mxu0  ;;  %v568_v9 = vmin.f32 %v566_v32, %v533_v8  ;;  %4154 = vst [vmem:[#allocation13_spill] sm:$0xff] %v2868_v10  ;;  %v4157_v32 = vld [vmem:[#allocation16_spill] sm:$0xff]  ;;  %v4158_v8 = vld [vmem:[#allocation18_spill] sm:$0xff]  ;;  %v552_v2 = vmin.f32 %v550_v5, %v551_v26  ;;  %v1330_v39 = vmin.f32 %v2836_v44, %v2840_v45  ;;  %v1260_v26 = vpop.permute.xlu0 %1259  ;;  %v2906_v58 = vadd.f32 %v2782_v40, %v2752_v50 }
 0x137   :  { %4156 = vst [vmem:[#allocation14_spill] sm:$0xff] %v2874_v47  ;;  %v2878_v46 = vadd.f32 %v2738_v60, %v4157_v32  ;;  %v2882_v54 = vadd.f32 %v2744_v21, %v4158_v8  ;;  %v2894_v60 = vadd.f32 %v2782_v40, %v2736_v59  ;;  %v1331_v21 = vmin.f32 %v2868_v10, %v2856_v27 }
 0x138   :  { %v1170_v51 = vpop.f32.mrf.mxu0  ;;  %v569_v41 = vmin.f32 %v567_v11, %v568_v9  ;;  %v1310_v11 = vmin.f32 %v2864_v43, %v2852_v52  ;;  %v1311_v18 = vmin.f32 %v1309_v14, %v2860_v24  ;;  %v2901_v32 = vadd.f32 %v2780_v19, %v2718_v42  ;;  %v1265_v14 = vpop.permute.xlu1 %1264 }
 0x139   :  { %v2910_v59 = vadd.f32 %v2806_v55, %v2768_v15  ;;  %v2914_v27 = vadd.f32 %v2810_v1, %v2788_v34  ;;  %vm578_vm1 = vcmp.lt.f32.partialorder %v2609_v20, inf  ;;  %v1332_v19 = vmin.f32 %v1330_v39, %v2878_v46 }
 0x13a   :  { %v1174_v0 = vpop.f32.mrf.mxu0  ;;  %v570_v9 = vrot.slane %v569_v41, 4  ;;  %4160 = vst [vmem:[#allocation9_spill] sm:$0xff] %v2901_v32  ;;  %v1312_v8 = vmin.f32 %v1310_v11, %v2874_v47  ;;  %v1333_v11 = vmin.f32 %v1331_v21, %v2882_v54  ;;  %v1313_v45 = vmin.f32 %v1311_v18, %v2886_v63 }
 0x13b   :  { %v553_v40 = vrot.slane %v552_v2, 1  ;;  %v2923_v15 = vadd.f32 %v2806_v55, %v2778_v6  ;;  %v2925_v34 = vadd.f32 %v1255_v12, %v1168_v17  ;;  %v1334_v47 = vmin.f32 %v1332_v19, %v2901_v32 }
 0x13c   :  { %v1176_v31 = vpop.f32.mrf.mxu0  ;;  %v571_v42 = vmin.f32 %v569_v41, %v570_v9  ;;  %v1314_v10 = vmin.f32 %v1312_v8, %v2894_v60  ;;  %v2930_v41 = vadd.f32 %v2810_v1, %v2796_v33  ;;  %v2933_v39 = vadd.f32 %v1250_v25, %v2804_v7  ;;  %v1270_v7 = vpop.permute.xlu0 %1269 }
 0x13d   :  { %v1335_v21 = vmin.f32 %v1333_v11, %v2906_v58  ;;  %v1315_v18 = vmin.f32 %v1313_v45, %v2910_v59  ;;  %v2941_v8 = vadd.f32 %v1250_v25, %v2816_v30  ;;  %v2943_v19 = vadd.f32 %v1255_v12, %v1170_v51 }
 0x13e   :  { %v1180_v5 = vpop.f32.mrf.mxu0  ;;  %v572_v44 = vrot.slane %v571_v42, 2  ;;  %4161 = vst [vmem:[#allocation15_spill] sm:$0xff] %v2930_v41  ;;  %v1316_v6 = vmin.f32 %v1314_v10, %v2914_v27  ;;  %v2945_v33 = vadd.f32 %v1260_v26, %v1174_v0  ;;  %v554_v32 = vmin.f32 %v552_v2, %v553_v40  ;;  %v1275_v10 = vpop.permute.xlu1 %1274 }
 0x13f   :  { %v2938_v55 = vadd.f32 %v1265_v14, %v1180_v5  ;;  %vm579_vm2 = vcmp.lt.f32.partialorder %v2704_v13, inf  ;;  %v1336_v11 = vmin.f32 %v1334_v47, %v2923_v15  ;;  %v1317_v30 = vmin.f32 %v1315_v18, %v2933_v39 }
 0x140   :  { %v1182_v50 = vpop.f32.mrf.mxu0  ;;  %v573_v17 = vmin.f32 %v571_v42, %v572_v44  ;;  %v1318_v45 = vmin.f32 %v1316_v6, %v2925_v34  ;;  %v1337_v44 = vmin.f32 %v1335_v21, %v2930_v41  ;;  %v2954_v12 = vadd.f32 %v1260_v26, %v1176_v31 }
 0x141   :  { %v2957_v2 = vadd.f32 %v1265_v14, %v1182_v50  ;;  %v1338_v40 = vmin.f32 %v1336_v11, %v2941_v8  ;;  %v1319_v21 = vmin.f32 %v1317_v30, %v2945_v33 }
 0x142   :  { %v1186_v9 = vpop.f32.mrf.mxu0  ;;  %v574_v5 = vrot.slane %v573_v17, 1  ;;  %v1320_v0 = vmin.f32 %v1318_v45, %v2938_v55  ;;  %v1339_v6 = vmin.f32 %v1337_v44, %v2943_v19 }
 0x143   :  { %v2952_v25 = vadd.f32 %v1270_v7, %v1186_v9  ;;  %v2966_v9 = vsel %vm578_vm1, %v554_v32, 0.0  ;;  %v2198_v32 = vmov 1.0  }
 0x144   :  { %v1188_v1 = vpop.f32.mrf.mxu0  ;;  %v575_v47 = vmin.f32 %v573_v17, %v574_v5  ;;  %v1340_v17 = vmin.f32 %v1338_v40, %v2954_v12  ;;  %v1341_v20 = vmin.f32 %v1339_v6, %v2957_v2  ;;  %vm628_vm4 = vcmp.eq.f32.partialorder %v2708_v23, %v2966_v9  ;;  %v4162_v6 = vld [vmem:[#allocation14_spill] sm:$0xff] }
 0x145   :  { %v2968_v31 = vadd.f32 %v1270_v7, %v1188_v1  ;;  %v1321_v18 = vmin.f32 %v1319_v21, %v2952_v25  ;;  %vm4113_vm6 = vcmp.eq.f32.partialorder %v2706_v16, %v2966_v9  ;;  %vm4109_vm8 = vcmp.eq.f32.partialorder %v2688_v48, %v2966_v9 }
 0x146   :  { %v1192_v51 = vpop.f32.mrf.mxu0  ;;  %v2975_v50 = vsel %vm579_vm2, %v575_v47, 0.0  ;;  %vm4102_vm10 = vcmp.eq.f32.partialorder %v2676_v28, %v2966_v9  ;;  %vm4099_vm12 = vcmp.eq.f32.partialorder %v2674_v38, %v2966_v9  ;;  %vm4096_vm14 = vcmp.eq.f32.partialorder %v2672_v37, %v2966_v9 }
 0x147   :  { %v2959_v42 = vadd.f32 %v1275_v10, %v1192_v51  ;;  %vm629_vm3 = vcmp.eq.f32.partialorder %v2708_v23, %v2975_v50  ;;  %vm627_vm5 = vcmp.eq.f32.partialorder %v2706_v16, %v2975_v50  ;;  %vm4111_vm7 = vcmp.eq.f32.partialorder %v2688_v48, %v2975_v50 }
 0x148   :  { %v1194_v41 = vpop.f32.mrf.mxu0  ;;  %1910 = vmatprep.subr.msk.mxu1 %vm629_vm3, %v2198_v32  ;;  %vm4106_vm9 = vcmp.eq.f32.partialorder %v2676_v28, %v2975_v50  ;;  %vm4101_vm11 = vcmp.eq.f32.partialorder %v2674_v38, %v2975_v50  ;;  %vm4098_vm13 = vcmp.eq.f32.partialorder %v2672_v37, %v2975_v50  ;;  %vm4095_vm15 = vcmp.eq.f32.partialorder %v2670_v36, %v2975_v50 }
 0x149   :  { %v1322_v26 = vmin.f32 %v1320_v0, %v2959_v42  ;;  %v2971_v14 = vadd.f32 %v1275_v10, %v1194_v41  ;;  %1911 = vmatpush1.msk.msra.mxu1 %vm628_vm4, %v2198_v32  ;;  %v1342_v41 = vmin.f32 %v1340_v17, %v2968_v31  ;;  %vm4094_vm0 = vcmp.eq.f32.partialorder %v2670_v36, %v2966_v9 }
 0x14a   :  { %1912 = vmatprep.subr.msk.mxu1 %vm627_vm5, %v2198_v32  ;;  %vm4097_vm1 = vcmp.eq.f32.partialorder %v2664_v3, %v2975_v50  ;;  %vm4100_vm2 = vcmp.eq.f32.partialorder %v2664_v3, %v2966_v9 }
 0x14b   :  { %v1323_v13 = vmin.f32 %v1321_v18, %v1322_v26  ;;  %v1343_v1 = vmin.f32 %v1341_v20, %v2971_v14  ;;  %1913 = vmatpush1.msk.msra.mxu1 %vm4113_vm6, %v2198_v32 }
 0x14c   :  { %1914 = vmatprep.subr.msk.mxu1 %vm4111_vm7, %v2198_v32 }
 0x14d   :  { %v1324_v7 = vrot.slane %v1323_v13, 4  ;;  %v1344_v11 = vmin.f32 %v1342_v41, %v1343_v1  ;;  %1915 = vmatpush1.msk.msra.mxu1 %vm4109_vm8, %v2198_v32 }
 0x14e   :  { %1916 = vmatprep.subr.msk.mxu1 %vm4106_vm9, %v2198_v32 }
 0x14f   :  { %v1325_v45 = vmin.f32 %v1323_v13, %v1324_v7  ;;  %v1345_v10 = vrot.slane %v1344_v11, 4  ;;  %1917 = vmatpush1.msk.msra.mxu1 %vm4102_vm10, %v2198_v32  ;;  %vm4107_vm10 = vcmp.eq.f32.partialorder %v2652_v29, %v2975_v50 }
 0x150   :  { %1918 = vmatprep.subr.msk.mxu1 %vm4101_vm11, %v2198_v32  ;;  %vm4108_vm11 = vcmp.eq.f32.partialorder %v2654_v22, %v2966_v9 }
 0x151   :  { %v1326_v5 = vrot.slane %v1325_v45, 2  ;;  %v1346_v44 = vmin.f32 %v1344_v11, %v1345_v10  ;;  %1919 = vmatpush1.msk.msra.mxu1 %vm4099_vm12, %v2198_v32  ;;  %v4163_v10 = vld [vmem:[#allocation20_spill] sm:$0xff] }
 0x152   :  { %1920 = vmatprep.subr.msk.mxu1 %vm4098_vm13, %v2198_v32 }
 0x153   :  { %v1327_v30 = vmin.f32 %v1325_v45, %v1326_v5  ;;  %1921 = vmatpush1.msk.msra.mxu1 %vm4096_vm14, %v2198_v32  ;;  %v1347_v0 = vrot.slane %v1346_v44, 2  ;;  %v4164_v5 = vld [vmem:[#allocation13_spill] sm:$0xff] }
 0x154   :  { %1922 = vmatprep.subr.msk.mxu1 %vm4095_vm15, %v2198_v32  ;;  %vm4104_vm15 = vcmp.eq.f32.partialorder %v2656_v4, %v2966_v9 }
 0x155   :  { %v1328_v51 = vrot.slane %v1327_v30, 1  ;;  %1923 = vmatpush1.msk.msra.mxu1 %vm4094_vm0, %v2198_v32  ;;  %v1348_v40 = vmin.f32 %v1346_v44, %v1347_v0  ;;  %vm4103_vm0 = vcmp.eq.f32.partialorder %v2656_v4, %v2975_v50  ;;  %v4165_v44 = vld [vmem:[#allocation21_spill] sm:$0xff] }
 0x156   :  { %1924 = vmatprep.subr.msk.mxu1 %vm4097_vm1, %v2198_v32 }
 0x157   :  { %v3056_v47 = vmin.f32 %v1327_v30, %v1328_v51  ;;  %1925 = vmatpush1.msk.msra.mxu1 %vm4100_vm2, %v2198_v32  ;;  %vm4105_vm2 = vcmp.eq.f32.partialorder %v2654_v22, %v2975_v50  ;;  %v1349_v21 = vrot.slane %v1348_v40, 1  ;;  %v4166_v30 = vld [vmem:[#allocation12_spill] sm:$0xff] }
 0x158   :  { %1926 = vmatprep.subr.msk.mxu1 %vm4103_vm0, %v2198_v32  ;;  %vm4110_vm0 = vcmp.eq.f32.partialorder %v2652_v29, %v2966_v9  ;;  %v3239_v51 = vld [vmem:[%s4070_s3] sm:$0xff] }
 0x159   :  { %vm1351_vm14 = vcmp.le.f32.partialorder %v2828_v49, %v3056_v47  ;;  %vm1353_vm1 = vcmp.le.f32.partialorder %v2864_v43, %v3056_v47  ;;  %vm1355_vm13 = vcmp.le.f32.partialorder %v2832_v35, %v3056_v47  ;;  %vm1357_vm12 = vcmp.le.f32.partialorder %v2852_v52, %v3056_v47  ;;  %1927 = vmatpush1.msk.msra.mxu1 %vm4104_vm15, %v2198_v32 }
 0x15a   :  { %1928 = vmatprep.subr.msk.mxu1 %vm4105_vm2, %v2198_v32  ;;  %vm4117_vm15 = vcmp.eq.f32.partialorder %v2650_v57, %v2966_v9  ;;  %v1383_v49 = vsel %vm1351_vm14, %v2622_v53, 128.0  ;;  %v1385_v35 = vsel %vm1353_vm1, %v2624_v56, 128.0  ;;  %v1387_v52 = vsel %vm1355_vm13, %v2626_v61, 128.0 }
 0x15b   :  { %v1389_v43 = vsel %vm1357_vm12, %v2628_v62, 128.0  ;;  %1929 = vmatpush1.msk.msra.mxu1 %vm4108_vm11, %v2198_v32  ;;  %vm1359_vm2 = vcmp.le.f32.partialorder %v2860_v24, %v3056_v47  ;;  %vm1361_vm9 = vcmp.le.f32.partialorder %v4162_v6, %v3056_v47  ;;  %vm4115_vm12 = vcmp.eq.f32.partialorder %v2628_v62, %v2966_v9 }
 0x15c   :  { %1930 = vmatprep.subr.msk.mxu1 %vm4107_vm10, %v2198_v32  ;;  %vm4112_vm13 = vcmp.eq.f32.partialorder %v2650_v57, %v2975_v50  ;;  %vm4114_vm14 = vcmp.eq.f32.partialorder %v2628_v62, %v2975_v50  ;;  %vm602_vm1 = vcmp.eq.f32.partialorder %v2626_v61, %v2966_v9  ;;  %vm600_vm10 = vcmp.eq.f32.partialorder %v2624_v56, %v2966_v9 }
 0x15d   :  { %1931 = vmatpush1.msk.msra.mxu1 %vm4110_vm0, %v2198_v32  ;;  %vm1363_vm11 = vcmp.le.f32.partialorder %v2886_v63, %v3056_v47  ;;  %vm1365_vm8 = vcmp.le.f32.partialorder %v2894_v60, %v3056_v47  ;;  %v1415_v26 = vmin.f32 %v1383_v49, %v1387_v52  ;;  %v1416_v18 = vmin.f32 %v1385_v35, %v1389_v43 }
 0x15e   :  { %1932 = vmatprep.subr.msk.mxu1 %vm4112_vm13, %v2198_v32  ;;  %vm598_vm0 = vcmp.eq.f32.partialorder %v2622_v53, %v2966_v9  ;;  %vm1367_vm7 = vcmp.le.f32.partialorder %v2910_v59, %v3056_v47  ;;  %v1391_v17 = vsel %vm1359_vm2, %v2650_v57, 128.0  ;;  %v1393_v20 = vsel %vm1361_vm9, %v2652_v29, 128.0 }
 0x15f   :  { %1933 = vmatpush1.msk.msra.mxu1 %vm4117_vm15, %v2198_v32  ;;  %vm4116_vm13 = vcmp.eq.f32.partialorder %v2626_v61, %v2975_v50  ;;  %vm1369_vm6 = vcmp.le.f32.partialorder %v2914_v27, %v3056_v47  ;;  %v1417_v13 = vmin.f32 %v1415_v26, %v1391_v17  ;;  %v1418_v41 = vmin.f32 %v1416_v18, %v1393_v20 }
 0x160   :  { %v3172_v24 = vmin.f32 %v1348_v40, %v1349_v21  ;;  %1934 = vmatprep.subr.msk.mxu1 %vm4114_vm14, %v2198_v32  ;;  %v1395_v1 = vsel %vm1363_vm11, %v2654_v22, 128.0  ;;  %v1397_v7 = vsel %vm1365_vm8, %v2656_v4, 128.0  ;;  %vm601_vm9 = vcmp.eq.f32.partialorder %v2624_v56, %v2975_v50 }
 0x161   :  { %1935 = vmatpush1.msk.msra.mxu1 %vm4115_vm12, %v2198_v32  ;;  %vm599_vm2 = vcmp.eq.f32.partialorder %v2622_v53, %v2975_v50  ;;  %vm1371_vm14 = vcmp.le.f32.partialorder %v2933_v39, %v3056_v47  ;;  %vm1373_vm11 = vcmp.le.f32.partialorder %v2925_v34, %v3056_v47  ;;  %v1419_v63 = vmin.f32 %v1417_v13, %v1395_v1 }
 0x162   :  { %v1420_v60 = vmin.f32 %v1418_v41, %v1397_v7  ;;  %1936 = vmatprep.subr.msk.mxu1 %vm4116_vm13, %v2198_v32  ;;  %vm1375_vm8 = vcmp.le.f32.partialorder %v2945_v33, %v3056_v47  ;;  %vm1377_vm12 = vcmp.le.f32.partialorder %v2938_v55, %v3056_v47  ;;  %v1399_v39 = vsel %vm1367_vm7, %v2664_v3, 128.0 }
 0x163   :  { %v1401_v34 = vsel %vm1369_vm6, %v2670_v36, 128.0  ;;  %1937 = vmatpush1.msk.msra.mxu1 %vm602_vm1, %v2198_v32  ;;  %v1421_v11 = vmin.f32 %v1419_v63, %v1399_v39  ;;  %vm1352_vm13 = vcmp.le.f32.partialorder %v4163_v10, %v3172_v24  ;;  %vm1354_vm15 = vcmp.le.f32.partialorder %v4164_v5, %v3172_v24  ;;  %v4171_v63 = vld [vmem:[#allocation15_spill] sm:$0xff] }
 0x164   :  { %v1422_v45 = vmin.f32 %v1420_v60, %v1401_v34  ;;  %1938 = vmatprep.subr.msk.mxu1 %vm601_vm9, %v2198_v32  ;;  %v1403_v27 = vsel %vm1371_vm14, %v2672_v37, 128.0  ;;  %v1405_v59 = vsel %vm1373_vm11, %v2674_v38, 128.0  ;;  %vm1356_vm6 = vcmp.le.f32.partialorder %v4165_v44, %v3172_v24  ;;  %v3335_v34 = vld [vmem:[%s4070_s3 + $0x10] sm:$0xff] }
 0x165   :  { %vm1358_vm7 = vcmp.le.f32.partialorder %v4166_v30, %v3172_v24  ;;  %1939 = vmatpush1.msk.msra.mxu1 %vm600_vm10, %v2198_v32  ;;  %vm1379_vm14 = vcmp.le.f32.partialorder %v2952_v25, %v3056_v47  ;;  %vm1381_vm11 = vcmp.le.f32.partialorder %v2959_v42, %v3056_v47  ;;  %v1423_v0 = vmin.f32 %v1421_v11, %v1403_v27  ;;  %v3302_v25 = vld [vmem:[%s4070_s3 + $0x8] sm:$0xff] }
 0x166   :  { %v1424_v40 = vmin.f32 %v1422_v45, %v1405_v59  ;;  %1940 = vmatprep.subr.msk.mxu1 %vm599_vm2, %v2198_v32  ;;  %v1407_v49 = vsel %vm1375_vm8, %v2676_v28, 128.0  ;;  %v1409_v35 = vsel %vm1377_vm12, %v2688_v48, 128.0  ;;  %v1384_v52 = vsel %vm1352_vm13, %v2622_v53, 128.0 }
 0x167   :  { %v1386_v43 = vsel %vm1354_vm15, %v2624_v56, 128.0  ;;  %1941 = vmatpush1.msk.msra.mxu1 %vm598_vm0, %v2198_v32  ;;  %v1425_v33 = vmin.f32 %v1423_v0, %v1407_v49  ;;  %v1388_v55 = vsel %vm1356_vm6, %v2626_v61, 128.0  ;;  %v1390_v21 = vsel %vm1358_vm7, %v2628_v62, 128.0 }
 0x168   :  { %v1426_v6 = vmin.f32 %v1424_v40, %v1409_v35  ;;  %767 = vmatmul.mubr.f32.vlgmr.msra.gmra.mxu1 %v3239_v51  ;;  %1942 = vmatprep.subr.msk.mxu1 %vm629_vm3, %v2198_v32  ;;  %v1411_v26 = vsel %vm1379_vm14, %v2706_v16, 128.0  ;;  %v1413_v18 = vsel %vm1381_vm11, %v2708_v23, 128.0  ;;  %vm1360_vm15 = vcmp.le.f32.partialorder %v2878_v46, %v3172_v24  ;;  %v4168_v46 = vld [vmem:[#allocation9_spill] sm:$0xff] }
 0x169   :  { %vm1362_vm12 = vcmp.le.f32.partialorder %v2882_v54, %v3172_v24  ;;  %1943 = vmatpush1.msk.msra.mxu1 %vm628_vm4, %v2198_v32  ;;  %v4167_v17 = vmov 0.0   ;;  %v1427_v42 = vmin.f32 %v1425_v33, %v1411_v26  ;;  %vm1364_vm3 = vcmp.le.f32.partialorder %v4168_v46, %v3172_v24 }
 0x16a   :  { %772 = vmatprep.mubr.f32.mxu1 %v4167_v17  ;;  %v1428_v20 = vmin.f32 %v1426_v6, %v1413_v18  ;;  %1944 = vmatprep.subr.msk.mxu1 %vm627_vm5, %v2198_v32  ;;  %vm1366_vm4 = vcmp.le.f32.partialorder %v2906_v58, %v3172_v24  ;;  %v1436_v54 = vmin.f32 %v1384_v52, %v1388_v55  ;;  %v1392_v1 = vsel %vm1360_vm15, %v2650_v57, 128.0 }
 0x16b   :  { %v1437_v13 = vmin.f32 %v1386_v43, %v1390_v21  ;;  %vm4169_vm13 = vcmp.eq.f32.partialorder %v2706_v16, %v2966_v9  ;;  %vm1368_vm8 = vcmp.le.f32.partialorder %v2923_v15, %v3172_v24  ;;  %v1394_v7 = vsel %vm1362_vm12, %v2652_v29, 128.0  ;;  %v3382_v15 = vld [vmem:[%s4070_s3 + $0x18] sm:$0xff] }
 0x16c   :  { %1945 = vmatpush1.msk.msra.mxu1 %vm4169_vm13, %v2198_v32  ;;  %v1429_v41 = vmin.f32 %v1427_v42, %v1428_v20  ;;  %vm4170_vm5 = vcmp.eq.f32.partialorder %v2688_v48, %v2975_v50  ;;  %vm1370_vm6 = vcmp.le.f32.partialorder %v4171_v63, %v3172_v24  ;;  %v1438_v60 = vmin.f32 %v1436_v54, %v1392_v1  ;;  %v3492_v1 = vld [vmem:[%s4069_s2] sm:$0xff] }
 0x16d   :  { %1946 = vmatprep.subr.msk.mxu1 %vm4170_vm5, %v2198_v32  ;;  %773 = vmatmul.mubr.f32.gmra.mxu1 %v3302_v25  ;;  %v1439_v39 = vmin.f32 %v1437_v13, %v1394_v7  ;;  %vm4172_vm7 = vcmp.eq.f32.partialorder %v2688_v48, %v2966_v9  ;;  %v1396_v45 = vsel %vm1364_vm3, %v2654_v22, 128.0  ;;  %v1398_v10 = vsel %vm1366_vm4, %v2656_v4, 128.0 }
 0x16e   :  { %1947 = vmatpush1.msk.msra.mxu1 %vm4172_vm7, %v2198_v32  ;;  %778 = vmatprep.mubr.f32.mxu1 %v4167_v17  ;;  %v1430_v11 = vrot.slane %v1429_v41, 4  ;;  %vm4173_vm14 = vcmp.eq.f32.partialorder %v2676_v28, %v2975_v50  ;;  %vm1372_vm11 = vcmp.le.f32.partialorder %v2941_v8, %v3172_v24  ;;  %vm1374_vm15 = vcmp.le.f32.partialorder %v2943_v19, %v3172_v24 }
 0x16f   :  { %1948 = vmatprep.subr.msk.mxu1 %vm4173_vm14, %v2198_v32  ;;  %v1440_v5 = vmin.f32 %v1438_v60, %v1396_v45  ;;  %v1441_v27 = vmin.f32 %v1439_v39, %v1398_v10  ;;  %vm4174_vm12 = vcmp.eq.f32.partialorder %v2676_v28, %v2966_v9  ;;  %vm1376_vm3 = vcmp.le.f32.partialorder %v2954_v12, %v3172_v24  ;;  %v2137_v39 = vld [vmem:[%s4067_s0] sm:$0xff] }
 0x170   :  { %1949 = vmatpush1.msk.msra.mxu1 %vm4174_vm12, %v2198_v32  ;;  %v1400_v58 = vsel %vm1368_vm8, %v2664_v3, 128.0  ;;  %v1402_v59 = vsel %vm1370_vm6, %v2670_v36, 128.0  ;;  %vm4175_vm4 = vcmp.eq.f32.partialorder %v2674_v38, %v2975_v50  ;;  %vm1378_vm13 = vcmp.le.f32.partialorder %v2957_v2, %v3172_v24 }
 0x171   :  { %1950 = vmatprep.subr.msk.mxu1 %vm4175_vm4, %v2198_v32  ;;  %779 = vmatmul.mubr.f32.gmra.mxu1 %v3335_v34  ;;  %v1442_v44 = vmin.f32 %v1440_v5, %v1400_v58  ;;  %v1443_v30 = vmin.f32 %v1441_v27, %v1402_v59  ;;  %vm4176_vm8 = vcmp.eq.f32.partialorder %v2674_v38, %v2966_v9  ;;  %v1404_v40 = vsel %vm1372_vm11, %v2672_v37, 128.0  ;;  %v2139_v5 = vld [vmem:[%s4067_s0 + $0x8] sm:$0xff]  ;;  %v2140_v58 = vld [vmem:[%s4067_s0 + $0x20] sm:$0xff] }
 0x172   :  { %1951 = vmatpush1.msk.msra.mxu1 %vm4176_vm8, %v2198_v32  ;;  %784 = vmatprep.mubr.f32.mxu1 %v4167_v17  ;;  %v1431_v0 = vmin.f32 %v1429_v41, %v1430_v11  ;;  %v1406_v49 = vsel %vm1374_vm15, %v2674_v38, 128.0  ;;  %vm4177_vm5 = vcmp.eq.f32.partialorder %v2672_v37, %v2975_v50  ;;  %vm1380_vm6 = vcmp.le.f32.partialorder %v2968_v31, %v3172_v24  ;;  %v2138_v11 = vld [vmem:[%s4067_s0 + $0x18] sm:$0xff] }
 0x173   :  { %1952 = vmatprep.subr.msk.mxu1 %vm4177_vm5, %v2198_v32  ;;  %vm1382_vm7 = vcmp.le.f32.partialorder %v2971_v14, %v3172_v24  ;;  %v1444_v35 = vmin.f32 %v1442_v44, %v1404_v40  ;;  %v1445_v52 = vmin.f32 %v1443_v30, %v1406_v49  ;;  %vm4178_vm14 = vcmp.eq.f32.partialorder %v2672_v37, %v2966_v9 }
 0x174   :  { %1953 = vmatpush1.msk.msra.mxu1 %vm4178_vm14, %v2198_v32  ;;  %v1408_v8 = vsel %vm1376_vm3, %v2676_v28, 128.0  ;;  %v1410_v19 = vsel %vm1378_vm13, %v2688_v48, 128.0  ;;  %vm4179_vm11 = vcmp.eq.f32.partialorder %v2670_v36, %v2975_v50  ;;  %vm4180_vm15 = vcmp.eq.f32.partialorder %v2670_v36, %v2966_v9 }
 0x175   :  { %1954 = vmatprep.subr.msk.mxu1 %vm4179_vm11, %v2198_v32  ;;  %785 = vmatmul.mubr.f32.gmra.mxu1 %v3382_v15  ;;  %v1446_v31 = vmin.f32 %v1444_v35, %v1408_v8  ;;  %v1447_v14 = vmin.f32 %v1445_v52, %v1410_v19  ;;  %v1432_v12 = vrot.slane %v1431_v0, 2  ;;  %v1412_v2 = vsel %vm1380_vm6, %v2706_v16, 128.0 }
 0x176   :  { %1955 = vmatpush1.msk.msra.mxu1 %vm4180_vm15, %v2198_v32  ;;  %855 = vmatprep.mubr.f32.mxu1 %v4167_v17  ;;  %v1414_v43 = vsel %vm1382_vm7, %v2708_v23, 128.0  ;;  %vm4181_vm12 = vcmp.eq.f32.partialorder %v2664_v3, %v2975_v50  ;;  %vm4182_vm3 = vcmp.eq.f32.partialorder %v2664_v3, %v2966_v9  ;;  %vm4183_vm4 = vcmp.eq.f32.partialorder %v2656_v4, %v2975_v50 }
 0x177   :  { %1956 = vmatprep.subr.msk.mxu1 %vm4181_vm12, %v2198_v32  ;;  %v1448_v33 = vmin.f32 %v1446_v31, %v1412_v2  ;;  %v1449_v6 = vmin.f32 %v1447_v14, %v1414_v43  ;;  %vm4184_vm13 = vcmp.eq.f32.partialorder %v2656_v4, %v2966_v9  ;;  %v1433_v21 = vmin.f32 %v1431_v0, %v1432_v12  ;;  %v2142_v2 = vld [vmem:[%s4067_s0 + $0x30] sm:$0xff] }
 0x178   :  { %1957 = vmatpush1.msk.msra.mxu1 %vm4182_vm3, %v2198_v32  ;;  %vm4185_vm8 = vcmp.eq.f32.partialorder %v2654_v22, %v2975_v50  ;;  %vm4186_vm5 = vcmp.eq.f32.partialorder %v2654_v22, %v2966_v9  ;;  %vm4187_vm6 = vcmp.eq.f32.partialorder %v2652_v29, %v2975_v50  ;;  %vm4188_vm7 = vcmp.eq.f32.partialorder %v2652_v29, %v2966_v9 }
 0x179   :  { %1958 = vmatprep.subr.msk.mxu1 %vm4183_vm4, %v2198_v32  ;;  %v1450_v55 = vmin.f32 %v1448_v33, %v1449_v6  ;;  %v1434_v42 = vrot.slane %v1433_v21, 1  ;;  %vm4189_vm14 = vcmp.eq.f32.partialorder %v2650_v57, %v2975_v50  ;;  %vm4190_vm11 = vcmp.eq.f32.partialorder %v2650_v57, %v2966_v9 }
 0x17a   :  { %1959 = vmatpush1.msk.msra.mxu1 %vm4184_vm13, %v2198_v32  ;;  %vm4191_vm15 = vcmp.eq.f32.partialorder %v2628_v62, %v2975_v50  ;;  %vm4192_vm12 = vcmp.eq.f32.partialorder %v2628_v62, %v2966_v9  ;;  %vm4193_vm3 = vcmp.eq.f32.partialorder %v2626_v61, %v2975_v50  ;;  %vm1459_vm4 = vcmp.lt.f32.partialorder %v3056_v47, inf  ;;  %v3533_v9 = vld [vmem:[%s4069_s2 + $0x8] sm:$0xff]  ;;  %v3580_v50 = vld [vmem:[%s4069_s2 + $0x10] sm:$0xff] }
 0x17b   :  { %1960 = vmatprep.subr.msk.mxu1 %vm4185_vm8, %v2198_v32  ;;  %v1451_v26 = vrot.slane %v1450_v55, 4  ;;  %v1435_v54 = vmin.f32 %v1433_v21, %v1434_v42 }
 0x17c   :  { %1961 = vmatpush1.msk.msra.mxu1 %vm4186_vm5, %v2198_v32 }
 0x17d   :  { %1962 = vmatprep.subr.msk.mxu1 %vm4187_vm6, %v2198_v32  ;;  %v1452_v18 = vmin.f32 %v1450_v55, %v1451_v26  ;;  %v3494_v7 = vsel %vm1459_vm4, %v1435_v54, 0.0  ;;  %v2143_v26 = vld [vmem:[%s4067_s0 + $0x38] sm:$0xff] }
 0x17e   :  { %1963 = vmatpush1.msk.msra.mxu1 %vm4188_vm7, %v2198_v32  ;;  %vm1489_vm8 = vcmp.eq.f32.partialorder %v2688_v48, %v3494_v7  ;;  %vm1487_vm6 = vcmp.eq.f32.partialorder %v2676_v28, %v3494_v7 }
 0x17f   :  { %1964 = vmatprep.subr.msk.mxu1 %vm4189_vm14, %v2198_v32  ;;  %v1453_v20 = vrot.slane %v1452_v18, 2  ;;  %vm1485_vm14 = vcmp.eq.f32.partialorder %v2674_v38, %v3494_v7 }
 0x180   :  { %1965 = vmatpush1.msk.msra.mxu1 %vm4190_vm11, %v2198_v32 }
 0x181   :  { %1966 = vmatprep.subr.msk.mxu1 %vm4191_vm15, %v2198_v32  ;;  %v1454_v46 = vmin.f32 %v1452_v18, %v1453_v20  ;;  %vm1483_vm15 = vcmp.eq.f32.partialorder %v2672_v37, %v3494_v7 }
 0x182   :  { %1967 = vmatpush1.msk.msra.mxu1 %vm4192_vm12, %v2198_v32 }
 0x183   :  { %1968 = vmatprep.subr.msk.mxu1 %vm4193_vm3, %v2198_v32  ;;  %v1455_v13 = vrot.slane %v1454_v46, 1  ;;  %vm4118_vm3 = vcmp.eq.f32.partialorder %v2670_v36, %v3494_v7 }
 0x184   :  { %1969 = vmatpush1.msk.msra.mxu1 %vm602_vm1, %v2198_v32  ;;  %vm1460_vm1 = vcmp.lt.f32.partialorder %v3172_v24, inf  ;;  %v3627_v24 = vld [vmem:[%s4069_s2 + $0x18] sm:$0xff] }
 0x185   :  { %1970 = vmatprep.subr.msk.mxu1 %vm601_vm9, %v2198_v32  ;;  %v1456_v41 = vmin.f32 %v1454_v46, %v1455_v13  ;;  %vm1493_vm9 = vcmp.eq.f32.partialorder %v2708_v23, %v3494_v7 }
 0x186   :  { %1971 = vmatpush1.msk.msra.mxu1 %vm600_vm10, %v2198_v32 }
 0x187   :  { %1972 = vmatprep.subr.msk.mxu1 %vm599_vm2, %v2198_v32  ;;  %v3501_v47 = vsel %vm1460_vm1, %v1456_v41, 0.0  ;;  %vm1491_vm2 = vcmp.eq.f32.partialorder %v2706_v16, %v3494_v7  ;;  %vm4120_vm1 = vcmp.eq.f32.partialorder %v2664_v3, %v3494_v7 }
 0x188   :  { %1973 = vmatpush1.msk.msra.mxu1 %vm598_vm0, %v2198_v32  ;;  %vm1494_vm10 = vcmp.eq.f32.partialorder %v2708_v23, %v3501_v47  ;;  %vm1492_vm0 = vcmp.eq.f32.partialorder %v2706_v16, %v3501_v47  ;;  %vm1490_vm13 = vcmp.eq.f32.partialorder %v2688_v48, %v3501_v47  ;;  %vm1488_vm5 = vcmp.eq.f32.partialorder %v2676_v28, %v3501_v47 }
 0x189   :  { %856 = vmatmul.mubr.f32.vlgmr.msra.gmra.mxu1 %v3492_v1  ;;  %2030 = vmatprep.subr.msk.mxu1 %vm1494_vm10, %v2198_v32  ;;  %vm1486_vm7 = vcmp.eq.f32.partialorder %v2674_v38, %v3501_v47  ;;  %vm1484_vm11 = vcmp.eq.f32.partialorder %v2672_v37, %v3501_v47  ;;  %vm1482_vm12 = vcmp.eq.f32.partialorder %v2670_v36, %v3501_v47 }
 0x18a   :  { %2062 = vmatprep.subr.msk.mxu0 %vm1494_vm10, %v2198_v32  ;;  %2031 = vmatpush1.msk.msra.mxu1 %vm1493_vm9, %v2198_v32  ;;  %vm4119_vm4 = vcmp.eq.f32.partialorder %v2664_v3, %v3501_v47 }
 0x18b   :  { %2063 = vmatpush1.msk.msra.mxu0 %vm1493_vm9, %v2198_v32  ;;  %2032 = vmatprep.subr.msk.mxu1 %vm1492_vm0, %v2198_v32 }
 0x18c   :  { %2064 = vmatprep.subr.msk.mxu0 %vm1492_vm0, %v2198_v32  ;;  %861 = vmatprep.mubr.f32.mxu1 %v4167_v17 }
 0x18d   :  { %2033 = vmatpush1.msk.msra.mxu1 %vm1491_vm2, %v2198_v32  ;;  %2065 = vmatpush1.msk.msra.mxu0 %vm1491_vm2, %v2198_v32 }
 0x18e   :  { %862 = vmatmul.mubr.f32.gmra.mxu1 %v3533_v9  ;;  %2034 = vmatprep.subr.msk.mxu1 %vm1490_vm13, %v2198_v32 }
 0x18f   :  { %2066 = vmatprep.subr.msk.mxu0 %vm1490_vm13, %v2198_v32  ;;  %2035 = vmatpush1.msk.msra.mxu1 %vm1489_vm8, %v2198_v32 }
 0x190   :  { %2067 = vmatpush1.msk.msra.mxu0 %vm1489_vm8, %v2198_v32  ;;  %2036 = vmatprep.subr.msk.mxu1 %vm1488_vm5, %v2198_v32 }
 0x191   :  { %2068 = vmatprep.subr.msk.mxu0 %vm1488_vm5, %v2198_v32  ;;  %867 = vmatprep.mubr.f32.mxu1 %v4167_v17 }
 0x192   :  { %2037 = vmatpush1.msk.msra.mxu1 %vm1487_vm6, %v2198_v32  ;;  %2069 = vmatpush1.msk.msra.mxu0 %vm1487_vm6, %v2198_v32 }
 0x193   :  { %868 = vmatmul.mubr.f32.gmra.mxu1 %v3580_v50  ;;  %2038 = vmatprep.subr.msk.mxu1 %vm1486_vm7, %v2198_v32 }
 0x194   :  { %2070 = vmatprep.subr.msk.mxu0 %vm1486_vm7, %v2198_v32  ;;  %2039 = vmatpush1.msk.msra.mxu1 %vm1485_vm14, %v2198_v32 }
 0x195   :  { %2071 = vmatpush1.msk.msra.mxu0 %vm1485_vm14, %v2198_v32  ;;  %2040 = vmatprep.subr.msk.mxu1 %vm1484_vm11, %v2198_v32 }
 0x196   :  { %2072 = vmatprep.subr.msk.mxu0 %vm1484_vm11, %v2198_v32  ;;  %873 = vmatprep.mubr.f32.mxu1 %v4167_v17 }
 0x197   :  { %2041 = vmatpush1.msk.msra.mxu1 %vm1483_vm15, %v2198_v32  ;;  %2073 = vmatpush1.msk.msra.mxu0 %vm1483_vm15, %v2198_v32 }
 0x198   :  { %874 = vmatmul.mubr.f32.gmra.mxu1 %v3627_v24  ;;  %2042 = vmatprep.subr.msk.mxu1 %vm1482_vm12, %v2198_v32 }
 0x199   :  { %2074 = vmatprep.subr.msk.mxu0 %vm1482_vm12, %v2198_v32  ;;  %2043 = vmatpush1.msk.msra.mxu1 %vm4118_vm3, %v2198_v32 }
 0x19a   :  { %2075 = vmatpush1.msk.msra.mxu0 %vm4118_vm3, %v2198_v32  ;;  %2044 = vmatprep.subr.msk.mxu1 %vm4119_vm4, %v2198_v32  ;;  %vm4121_vm3 = vcmp.eq.f32.partialorder %v2656_v4, %v3501_v47 }
 0x19b   :  { %2076 = vmatprep.subr.msk.mxu0 %vm4119_vm4, %v2198_v32  ;;  %2045 = vmatpush1.msk.msra.mxu1 %vm4120_vm1, %v2198_v32  ;;  %vm4122_vm4 = vcmp.eq.f32.partialorder %v2656_v4, %v3494_v7 }
 0x19c   :  { %2077 = vmatpush1.msk.msra.mxu0 %vm4120_vm1, %v2198_v32  ;;  %2046 = vmatprep.subr.msk.mxu1 %vm4121_vm3, %v2198_v32  ;;  %vm4123_vm1 = vcmp.eq.f32.partialorder %v2654_v22, %v3501_v47 }
 0x19d   :  { %2078 = vmatprep.subr.msk.mxu0 %vm4121_vm3, %v2198_v32  ;;  %2047 = vmatpush1.msk.msra.mxu1 %vm4122_vm4, %v2198_v32  ;;  %vm4124_vm3 = vcmp.eq.f32.partialorder %v2654_v22, %v3494_v7 }
 0x19e   :  { %2079 = vmatpush1.msk.msra.mxu0 %vm4122_vm4, %v2198_v32  ;;  %2048 = vmatprep.subr.msk.mxu1 %vm4123_vm1, %v2198_v32  ;;  %vm4125_vm4 = vcmp.eq.f32.partialorder %v2652_v29, %v3501_v47 }
 0x19f   :  { %2080 = vmatprep.subr.msk.mxu0 %vm4123_vm1, %v2198_v32  ;;  %2049 = vmatpush1.msk.msra.mxu1 %vm4124_vm3, %v2198_v32  ;;  %vm4126_vm1 = vcmp.eq.f32.partialorder %v2652_v29, %v3494_v7 }
 0x1a0   :  { %2081 = vmatpush1.msk.msra.mxu0 %vm4124_vm3, %v2198_v32  ;;  %2050 = vmatprep.subr.msk.mxu1 %vm4125_vm4, %v2198_v32  ;;  %vm4127_vm3 = vcmp.eq.f32.partialorder %v2650_v57, %v3501_v47 }
 0x1a1   :  { %2082 = vmatprep.subr.msk.mxu0 %vm4125_vm4, %v2198_v32  ;;  %2051 = vmatpush1.msk.msra.mxu1 %vm4126_vm1, %v2198_v32  ;;  %vm4128_vm4 = vcmp.eq.f32.partialorder %v2650_v57, %v3494_v7 }
 0x1a2   :  { %2083 = vmatpush1.msk.msra.mxu0 %vm4126_vm1, %v2198_v32  ;;  %2052 = vmatprep.subr.msk.mxu1 %vm4127_vm3, %v2198_v32  ;;  %vm4129_vm1 = vcmp.eq.f32.partialorder %v2628_v62, %v3501_v47 }
 0x1a3   :  { %2084 = vmatprep.subr.msk.mxu0 %vm4127_vm3, %v2198_v32  ;;  %2053 = vmatpush1.msk.msra.mxu1 %vm4128_vm4, %v2198_v32  ;;  %vm4130_vm3 = vcmp.eq.f32.partialorder %v2628_v62, %v3494_v7 }
 0x1a4   :  { %2085 = vmatpush1.msk.msra.mxu0 %vm4128_vm4, %v2198_v32  ;;  %2054 = vmatprep.subr.msk.mxu1 %vm4129_vm1, %v2198_v32  ;;  %vm4131_vm4 = vcmp.eq.f32.partialorder %v2626_v61, %v3501_v47 }
 0x1a5   :  { %2086 = vmatprep.subr.msk.mxu0 %vm4129_vm1, %v2198_v32  ;;  %2055 = vmatpush1.msk.msra.mxu1 %vm4130_vm3, %v2198_v32  ;;  %vm4132_vm1 = vcmp.eq.f32.partialorder %v2626_v61, %v3494_v7 }
 0x1a6   :  { %2087 = vmatpush1.msk.msra.mxu0 %vm4130_vm3, %v2198_v32  ;;  %2056 = vmatprep.subr.msk.mxu1 %vm4131_vm4, %v2198_v32  ;;  %vm4133_vm3 = vcmp.eq.f32.partialorder %v2624_v56, %v3501_v47 }
 0x1a7   :  { %2088 = vmatprep.subr.msk.mxu0 %vm4131_vm4, %v2198_v32  ;;  %2057 = vmatpush1.msk.msra.mxu1 %vm4132_vm1, %v2198_v32  ;;  %vm1465_vm4 = vcmp.eq.f32.partialorder %v2624_v56, %v3494_v7 }
 0x1a8   :  { %2089 = vmatpush1.msk.msra.mxu0 %vm4132_vm1, %v2198_v32  ;;  %2058 = vmatprep.subr.msk.mxu1 %vm4133_vm3, %v2198_v32  ;;  %vm1464_vm1 = vcmp.eq.f32.partialorder %v2622_v53, %v3501_v47 }
 0x1a9   :  { %2090 = vmatprep.subr.msk.mxu0 %vm4133_vm3, %v2198_v32  ;;  %2059 = vmatpush1.msk.msra.mxu1 %vm1465_vm4, %v2198_v32  ;;  %vm1463_vm3 = vcmp.eq.f32.partialorder %v2622_v53, %v3494_v7 }
 0x1aa   :  { %2091 = vmatpush1.msk.msra.mxu0 %vm1465_vm4, %v2198_v32  ;;  %2060 = vmatprep.subr.msk.mxu1 %vm1464_vm1, %v2198_v32 }
 0x1ab   :  { %2092 = vmatprep.subr.msk.mxu0 %vm1464_vm1, %v2198_v32  ;;  %2061 = vmatpush1.msk.msra.mxu1 %vm1463_vm3, %v2198_v32 }
 0x1ac   :  { %1631 = vmatprep.mubr.f32.mxu1 %v4167_v17  ;;  %2093 = vmatpush1.msk.msra.mxu0 %vm1463_vm3, %v2198_v32 }
 0x1ad   :  { %1632 = vmatmul.mubr.f32.vlgmr.msra.gmra.mxu1 %v3239_v51  ;;  %2094 = vmatprep.subr.msk.mxu1 %vm1494_vm10, %v2198_v32  ;;  %vm4194_vm10 = vcmp.eq.f32.partialorder %v2670_v36, %v3494_v7 }
 0x1ae   :  { %1721 = vmatmul.mubr.f32.vlgmr.msra.gmra.mxu0 %v3492_v1  ;;  %2110 = vmatpush1.msk.msra.mxu1 %vm1493_vm9, %v2198_v32  ;;  %vm4195_vm9 = vcmp.eq.f32.partialorder %v2664_v3, %v3501_v47 }
 0x1af   :  { %1637 = vmatprep.mubr.f32.mxu1 %v4167_v17  ;;  %2095 = vmatprep.subr.msk.mxu1 %vm1492_vm0, %v2198_v32  ;;  %vm4196_vm0 = vcmp.eq.f32.partialorder %v2664_v3, %v3494_v7 }
 0x1b0   :  { %2111 = vmatpush1.msk.msra.mxu1 %vm1491_vm2, %v2198_v32  ;;  %vm4197_vm2 = vcmp.eq.f32.partialorder %v2656_v4, %v3501_v47 }
 0x1b1   :  { %2096 = vmatprep.subr.msk.mxu1 %vm1490_vm13, %v2198_v32  ;;  %1638 = vmatmul.mubr.f32.gmra.mxu1 %v3302_v25  ;;  %vm4198_vm13 = vcmp.eq.f32.partialorder %v2656_v4, %v3494_v7  ;;  %v4210_v4 = vlaneseq }
 0x1b2   :  { %2112 = vmatpush1.msk.msra.mxu1 %vm1489_vm8, %v2198_v32  ;;  %1643 = vmatprep.mubr.f32.mxu1 %v4167_v17  ;;  %vm4199_vm8 = vcmp.eq.f32.partialorder %v2654_v22, %v3501_v47 }
 0x1b3   :  { %2097 = vmatprep.subr.msk.mxu1 %vm1488_vm5, %v2198_v32  ;;  %vm4200_vm5 = vcmp.eq.f32.partialorder %v2654_v22, %v3494_v7 }
 0x1b4   :  { %2113 = vmatpush1.msk.msra.mxu1 %vm1487_vm6, %v2198_v32  ;;  %vm4201_vm6 = vcmp.eq.f32.partialorder %v2652_v29, %v3501_v47 }
 0x1b5   :  { %2098 = vmatprep.subr.msk.mxu1 %vm1486_vm7, %v2198_v32  ;;  %1644 = vmatmul.mubr.f32.gmra.mxu1 %v3335_v34  ;;  %vm4202_vm7 = vcmp.eq.f32.partialorder %v2652_v29, %v3494_v7 }
 0x1b6   :  { %2114 = vmatpush1.msk.msra.mxu1 %vm1485_vm14, %v2198_v32  ;;  %1649 = vmatprep.mubr.f32.mxu1 %v4167_v17  ;;  %vm4203_vm14 = vcmp.eq.f32.partialorder %v2650_v57, %v3501_v47 }
 0x1b7   :  { %2099 = vmatprep.subr.msk.mxu1 %vm1484_vm11, %v2198_v32  ;;  %vm4204_vm11 = vcmp.eq.f32.partialorder %v2650_v57, %v3494_v7 }
 0x1b8   :  { %2115 = vmatpush1.msk.msra.mxu1 %vm1483_vm15, %v2198_v32  ;;  %vm4205_vm15 = vcmp.eq.f32.partialorder %v2628_v62, %v3501_v47 }
 0x1b9   :  { %2100 = vmatprep.subr.msk.mxu1 %vm1482_vm12, %v2198_v32  ;;  %1650 = vmatmul.mubr.f32.gmra.mxu1 %v3382_v15  ;;  %vm4206_vm12 = vcmp.eq.f32.partialorder %v2628_v62, %v3494_v7  ;;  %v2141_v15 = vld [vmem:[%s4067_s0 + $0x28] sm:$0xff] }
 0x1ba   :  { %2116 = vmatpush1.msk.msra.mxu1 %vm4194_vm10, %v2198_v32  ;;  %1726 = vmatprep.mubr.f32.mxu1 %v4167_v17  ;;  %vm4207_vm10 = vcmp.eq.f32.partialorder %v2626_v61, %v3501_v47 }
 0x1bb   :  { %2101 = vmatprep.subr.msk.mxu1 %vm4195_vm9, %v2198_v32  ;;  %vm4208_vm9 = vcmp.eq.f32.partialorder %v2626_v61, %v3494_v7 }
 0x1bc   :  { %2117 = vmatpush1.msk.msra.mxu1 %vm4196_vm0, %v2198_v32  ;;  %vm4209_vm0 = vcmp.eq.f32.partialorder %v2624_v56, %v3501_v47 }
 0x1bd   :  { %2102 = vmatprep.subr.msk.mxu1 %vm4197_vm2, %v2198_v32 }
 0x1be   :  { %2118 = vmatpush1.msk.msra.mxu1 %vm4198_vm13, %v2198_v32 }
 0x1bf   :  { %2103 = vmatprep.subr.msk.mxu1 %vm4199_vm8, %v2198_v32 }
 0x1c0   :  { %2119 = vmatpush1.msk.msra.mxu1 %vm4200_vm5, %v2198_v32 }
 0x1c1   :  { %2104 = vmatprep.subr.msk.mxu1 %vm4201_vm6, %v2198_v32 }
 0x1c2   :  { %2120 = vmatpush1.msk.msra.mxu1 %vm4202_vm7, %v2198_v32 }
 0x1c3   :  { %2105 = vmatprep.subr.msk.mxu1 %vm4203_vm14, %v2198_v32 }
 0x1c4   :  { %2121 = vmatpush1.msk.msra.mxu1 %vm4204_vm11, %v2198_v32 }
 0x1c5   :  { %2106 = vmatprep.subr.msk.mxu1 %vm4205_vm15, %v2198_v32 }
 0x1c6   :  { %2122 = vmatpush1.msk.msra.mxu1 %vm4206_vm12, %v2198_v32 }
 0x1c7   :  { %2107 = vmatprep.subr.msk.mxu1 %vm4207_vm10, %v2198_v32 }
 0x1c8   :  { %2123 = vmatpush1.msk.msra.mxu1 %vm4208_vm9, %v2198_v32 }
 0x1c9   :  { %2108 = vmatprep.subr.msk.mxu1 %vm4209_vm0, %v2198_v32 }
 0x1ca   :  { %2124 = vmatpush1.msk.msra.mxu1 %vm1465_vm4, %v2198_v32  ;;  %vm3993_vm4 = vcmp.lt.s32.totalorder %v4210_v4, 256 }
 0x1cb   :  { %2109 = vmatprep.subr.msk.mxu1 %vm1464_vm1, %v2198_v32  ;;  %32 = vst.msk [vmem:[#allocation2] sm:$0x3] %vm3993_vm4, %v4167_v17 }
 0x1cc   :  { %2125 = vmatpush1.msk.msra.mxu1 %vm1463_vm3, %v2198_v32  ;;  %vm1824_vm3 = vcmask 1040384  }
 0x1cd   :  { %1727 = vmatmul.mubr.f32.vlgmr.msra.gmra.mxu1 %v3533_v9  ;;  %v2199_v9 = vmov 1966171168  }
 0x1ce   :  { %1732 = vmatprep.mubr.f32.mxu1 %v4167_v17 }
 0x1d1   :  { %1733 = vmatmul.mubr.f32.gmra.mxu1 %v3580_v50  ;;  %v927_v50 = vunpack.c.l.s4 %v2199_v9 }
 0x1d2   :  { %1738 = vmatprep.mubr.f32.mxu1 %v4167_v17  ;;  %v2136_v17 = vld [vmem:[%s4067_s0 + $0x10] sm:$0xff] }
 0x1d5   :  { %1739 = vmatmul.mubr.f32.gmra.mxu1 %v3627_v24 }
 0x228   :  { %v768_v3 = vpop.f32.mrf.mxu1 }
 0x22a   :  { %v770_v53 = vpop.f32.mrf.mxu1 }
 0x22d   :  { %v774_v56 = vpop.f32.mrf.mxu1 }
 0x22f   :  { %v776_v61 = vpop.f32.mrf.mxu1 }
 0x231   :  { %v780_v62 = vpop.f32.mrf.mxu1 }
 0x233   :  { %v782_v28 = vpop.f32.mrf.mxu1 }
 0x235   :  { %v786_v29 = vpop.f32.mrf.mxu1 }
 0x237   :  { %v788_v22 = vpop.f32.mrf.mxu1 }
 0x249   :  { %v857_v36 = vpop.f32.mrf.mxu1 }
 0x24a   :  { %v858_v37 = vadd.f32 %v857_v36, %v768_v3 }
 0x24b   :  { %v859_v38 = vpop.f32.mrf.mxu1 }
 0x24c   :  { %880 = vst [vmem:[#allocation3] sm:$0xff] %v858_v37  ;;  %v860_v48 = vadd.f32 %v859_v38, %v770_v53  ;;  %v888_v34 = vsub.f32 %v858_v37, %v2137_v39 }
 0x24e   :  { %881 = vst [vmem:[#allocation3 + $0x8] sm:$0xff] %v860_v48  ;;  %v863_v16 = vpop.f32.mrf.mxu1  ;;  %v889_v27 = vsub.f32 %v860_v48, %v2139_v5  ;;  %v897_v49 = vmul.f32 %v888_v34, %v888_v34 }
 0x24f   :  { %v864_v23 = vadd.f32 %v863_v16, %v774_v56  ;;  %v928_v56 = vunpack.c.0.s8 %v927_v50 }
 0x250   :  { %v865_v32 = vpop.f32.mrf.mxu1  ;;  %v898_v19 = vmul.f32 %v889_v27, %v889_v27 }
 0x251   :  { %882 = vst [vmem:[#allocation3 + $0x10] sm:$0xff] %v864_v23  ;;  %v866_v51 = vadd.f32 %v865_v32, %v776_v61  ;;  %v890_v25 = vsub.f32 %v864_v23, %v2136_v17  ;;  %v896_v17 = vld [vmem:[#allocation2] sm:$0x3] }
 0x253   :  { %883 = vst [vmem:[#allocation3 + $0x18] sm:$0xff] %v866_v51  ;;  %v869_v63 = vpop.f32.mrf.mxu1  ;;  %v891_v45 = vsub.f32 %v866_v51, %v2138_v11  ;;  %v899_v30 = vmul.f32 %v890_v25, %v890_v25 }
 0x254   :  { %v870_v60 = vadd.f32 %v869_v63, %v780_v62 }
 0x255   :  { %v871_v10 = vpop.f32.mrf.mxu1  ;;  %v900_v35 = vmul.f32 %v891_v45, %v891_v45  ;;  %v905_v14 = vadd.f32 %v899_v30, %v897_v49  ;;  %v2146_v49 = vld [vmem:[%s4067_s0 + $0x58] sm:$0xff] }
 0x256   :  { %884 = vst [vmem:[#allocation3 + $0x20] sm:$0xff] %v870_v60  ;;  %v892_v59 = vsub.f32 %v870_v60, %v2140_v58  ;;  %v872_v44 = vadd.f32 %v871_v10, %v782_v28 }
 0x257   :  { %v914_v6 = vadd.f32 %v900_v35, %v898_v19 }
 0x258   :  { %885 = vst [vmem:[#allocation3 + $0x28] sm:$0xff] %v872_v44  ;;  %v893_v0 = vsub.f32 %v872_v44, %v2141_v15  ;;  %v875_v40 = vpop.f32.mrf.mxu1  ;;  %v901_v52 = vmul.f32 %v892_v59, %v892_v59  ;;  %v2144_v59 = vld [vmem:[%s4067_s0 + $0x50] sm:$0xff]  ;;  %v2145_v15 = vld [vmem:[%s4067_s0 + $0x40] sm:$0xff] }
 0x259   :  { %v876_v8 = vadd.f32 %v875_v40, %v786_v29  ;;  %v4213_v29 = vld [vmem:[#allocation11_spill] sm:$0xff] }
 0x25a   :  { %v877_v31 = vpop.f32.mrf.mxu1  ;;  %v902_v12 = vmul.f32 %v893_v0, %v893_v0  ;;  %v906_v55 = vadd.f32 %v905_v14, %v901_v52 }
 0x25b   :  { %886 = vst [vmem:[#allocation3 + $0x30] sm:$0xff] %v876_v8  ;;  %v894_v43 = vsub.f32 %v876_v8, %v2142_v2  ;;  %v878_v33 = vadd.f32 %v877_v31, %v788_v22  ;;  %v4025_v22 = vsub.s32 %v928_v56, %v4213_v29  ;;  %v2147_v8 = vld [vmem:[%s4067_s0 + $0x48] sm:$0xff] }
 0x25c   :  { %v915_v42 = vadd.f32 %v914_v6, %v902_v12  ;;  %v2148_v12 = vld [vmem:[%s4067_s0 + $0x60] sm:$0xff] }
 0x25d   :  { %v903_v21 = vmul.f32 %v894_v43, %v894_v43  ;;  %887 = vst [vmem:[#allocation3 + $0x38] sm:$0xff] %v878_v33  ;;  %v895_v18 = vsub.f32 %v878_v33, %v2143_v26  ;;  %v2149_v26 = vld [vmem:[%s4067_s0 + $0x68] sm:$0xff] }
 0x25f   :  { %v907_v20 = vadd.f32 %v906_v55, %v903_v21  ;;  %v904_v46 = vmul.f32 %v895_v18, %v895_v18 }
 0x261   :  { %v908_v54 = vrot.slane %v907_v20, 4  ;;  %v916_v13 = vadd.f32 %v915_v42, %v904_v46 }
 0x263   :  { %v909_v41 = vadd.f32 %v908_v54, %v907_v20  ;;  %v917_v1 = vrot.slane %v916_v13, 4 }
 0x265   :  { %v910_v7 = vrot.slane %v909_v41, 2  ;;  %v918_v47 = vadd.f32 %v917_v1, %v916_v13 }
 0x267   :  { %v911_v24 = vadd.f32 %v910_v7, %v909_v41  ;;  %v919_v4 = vrot.slane %v918_v47, 2  ;;  %v2150_v41 = vld [vmem:[%s4067_s0 + $0x70] sm:$0xff] }
 0x269   :  { %v912_v3 = vrot.slane %v911_v24, 1  ;;  %v920_v53 = vadd.f32 %v919_v4, %v918_v47 }
 0x26b   :  { %v921_v61 = vrot.slane %v920_v53, 1  ;;  %v913_v62 = vadd.f32 %v912_v3, %v911_v24  ;;  %v2151_v24 = vld [vmem:[%s4067_s0 + $0x78] sm:$0xff]  ;;  %s2200_s0 = smov [#allocation3]  }
 0x26c   :  { %s1837_s12 = sshll.u32 %s2200_s0, 4  ;;  %s1838_s12 = int_to_ptr.vmem [resolvable:$true] %s1837_s12 }
 0x26d   :  { %v922_v28 = vadd.f32 %v921_v61, %v920_v53  ;;  %v1633_v36 = vpop.f32.mrf.mxu1  ;;  %s2152_s13 = scalar_lea.vmem %s1838_s12, 2048  ;;  %p2157_p1 = scmp.lt.s32.totalorder %s1838_s12, %s1838_s12 }
 0x26e   :  { %v1722_v37 = vpop.f32.mrf.mxu0  ;;  %p2153_p0 = scmp.ne.s32.totalorder %s1838_s12, %s2152_s13  ;;  %p2158_p2 = scmp.lt.s32.totalorder %s2152_s13, %s2152_s13 }
 0x26f   :  { %v925_v38 = vcombine.low %v913_v62, %v922_v28  ;;  %v1723_v48 = vadd.f32 %v1722_v37, %v1633_v36  ;;  %v1635_v16 = vpop.f32.mrf.mxu1 }
 0x270   :  { %v1724_v23 = vpop.f32.mrf.mxu0  ;;  %p2159_p3 = por %p2158_p2, %p2157_p1 }
 0x271   :  { %v932_v32 = vrot.slane %v925_v38, %v4025_v22  ;;  %1746 = vst [vmem:[#allocation3 + $0x40] sm:$0xff] %v1723_v48  ;;  %v1725_v51 = vadd.f32 %v1724_v23, %v1635_v16  ;;  %v1639_v60 = vpop.f32.mrf.mxu1  ;;  %v1754_v0 = vsub.f32 %v1723_v48, %v2145_v15 }
 0x272   :  { %p2160_p4 = pnand %p2159_p3, %p2153_p0 }
 0x273   :  { %v939_v25 = vrot.slane %v932_v32, %v4025_v22  ;;  %1747 = vst [vmem:[#allocation3 + $0x48] sm:$0xff] %v1725_v51  ;;  %v1641_v39 = vpop.f32.mrf.mxu1  ;;  %v1755_v19 = vsub.f32 %v1725_v51, %v2147_v8  ;;  %v1763_v33 = vmul.f32 %v1754_v0, %v1754_v0 }
 0x275   :  { %v941_v63 = vadd.f32 %v939_v25, %v896_v17  ;;  %v1645_v34 = vpop.f32.mrf.mxu1  ;;  %v1764_v20 = vmul.f32 %v1755_v19, %v1755_v19 }
 0x277   :  { %946 = vst.msk [vmem:[#allocation2] sm:$0x3] %vm3993_vm4, %v941_v63  ;;  %v1647_v11 = vpop.f32.mrf.mxu1 }
 0x279   :  { %v1651_v45 = vpop.f32.mrf.mxu1 }
 0x27b   :  { %v1653_v10 = vpop.f32.mrf.mxu1 }
 0x28d   :  { %v1728_v5 = vpop.f32.mrf.mxu1 }
 0x28e   :  { %v1729_v27 = vadd.f32 %v1728_v5, %v1639_v60 }
 0x28f   :  { %v1730_v58 = vpop.f32.mrf.mxu1 }
 0x290   :  { %1748 = vst [vmem:[#allocation3 + $0x50] sm:$0xff] %v1729_v27  ;;  %v1756_v44 = vsub.f32 %v1729_v27, %v2144_v59  ;;  %v1731_v30 = vadd.f32 %v1730_v58, %v1641_v39 }
 0x291   :  { %v1734_v40 = vpop.f32.mrf.mxu1 }
 0x292   :  { %1749 = vst [vmem:[#allocation3 + $0x58] sm:$0xff] %v1731_v30  ;;  %v1757_v35 = vsub.f32 %v1731_v30, %v2146_v49  ;;  %v1735_v52 = vadd.f32 %v1734_v40, %v1645_v34  ;;  %v1765_v14 = vmul.f32 %v1756_v44, %v1756_v44  ;;  %v1762_v34 = vld [vmem:[#allocation2] sm:$0x3] }
 0x293   :  { %v1736_v31 = vpop.f32.mrf.mxu1 }
 0x294   :  { %1750 = vst [vmem:[#allocation3 + $0x60] sm:$0xff] %v1735_v52  ;;  %v1758_v2 = vsub.f32 %v1735_v52, %v2148_v12  ;;  %v1737_v43 = vadd.f32 %v1736_v31, %v1647_v11  ;;  %v1766_v55 = vmul.f32 %v1757_v35, %v1757_v35  ;;  %v1771_v54 = vadd.f32 %v1765_v14, %v1763_v33 }
 0x295   :  { %v1740_v6 = vpop.f32.mrf.mxu1 }
 0x296   :  { %v1767_v21 = vmul.f32 %v1758_v2, %v1758_v2  ;;  %1751 = vst [vmem:[#allocation3 + $0x68] sm:$0xff] %v1737_v43  ;;  %v1759_v18 = vsub.f32 %v1737_v43, %v2149_v26  ;;  %v1741_v42 = vadd.f32 %v1740_v6, %v1651_v45  ;;  %v1780_v47 = vadd.f32 %v1766_v55, %v1764_v20 }
 0x297   :  { %v1742_v46 = vpop.f32.mrf.mxu1  ;;  %v1816_v45 = vsub.s32 0, %v4213_v29 }
 0x298   :  { %v1768_v13 = vmul.f32 %v1759_v18, %v1759_v18  ;;  %1752 = vst [vmem:[#allocation3 + $0x70] sm:$0xff] %v1741_v42  ;;  %v1760_v1 = vsub.f32 %v1741_v42, %v2150_v41  ;;  %v1743_v7 = vadd.f32 %v1742_v46, %v1653_v10  ;;  %v1772_v9 = vadd.f32 %v1771_v54, %v1767_v21 }
 0x299   :  { %v1820_v10 = vsub.s32 1, %v4213_v29 }
 0x29a   :  { %v1769_v50 = vmul.f32 %v1760_v1, %v1760_v1  ;;  %1753 = vst [vmem:[#allocation3 + $0x78] sm:$0xff] %v1743_v7  ;;  %v1761_v4 = vsub.f32 %v1743_v7, %v2151_v24  ;;  %v1781_v3 = vadd.f32 %v1780_v47, %v1768_v13 }
 0x29c   :  { %v1773_v53 = vadd.f32 %v1772_v9, %v1769_v50  ;;  %v1770_v56 = vmul.f32 %v1761_v4, %v1761_v4 }
 0x29e   :  { %v1774_v61 = vrot.slane %v1773_v53, 4  ;;  %v1782_v62 = vadd.f32 %v1781_v3, %v1770_v56 }
 0x2a0   :  { %v1775_v28 = vadd.f32 %v1774_v61, %v1773_v53  ;;  %v1783_v36 = vrot.slane %v1782_v62, 4 }
 0x2a2   :  { %v1776_v37 = vrot.slane %v1775_v28, 2  ;;  %v1784_v38 = vadd.f32 %v1783_v36, %v1782_v62 }
 0x2a4   :  { %v1777_v48 = vadd.f32 %v1776_v37, %v1775_v28  ;;  %v1785_v16 = vrot.slane %v1784_v38, 2 }
 0x2a6   :  { %v1778_v23 = vrot.slane %v1777_v48, 1  ;;  %v1786_v32 = vadd.f32 %v1785_v16, %v1784_v38 }
 0x2a8   :  { %v1787_v51 = vrot.slane %v1786_v32, 1  ;;  %v1779_v17 = vadd.f32 %v1778_v23, %v1777_v48 }
 0x2aa   :  { %v1788_v25 = vadd.f32 %v1787_v51, %v1786_v32 }
 0x2ac   :  { %v1791_v63 = vcombine.low %v1779_v17, %v1788_v25 }
 0x2ae   :  { %v1798_v60 = vrot.slane %v1791_v63, %v4025_v22 }
 0x2b0   :  { %v1805_v39 = vrot.slane %v1798_v60, %v4025_v22 }
 0x2b2   :  { %v1807_v11 = vadd.f32 %v1805_v39, %v1762_v34 }
 0x2b4   :  { %1808 = vst.msk [vmem:[#allocation2] sm:$0x3] %vm3993_vm4, %v1807_v11 }
 0x2bb   :  { %v1812_v5 = vld [vmem:[#allocation2] sm:$0x3] }
 0x2bc   :  { %v1817_v27 = vrot.slane %v1812_v5, %v1816_v45  ;;  %v1821_v58 = vrot.slane %v1812_v5, %v1820_v10 }
 0x2be   :  { %v1825_v59 = vsel %vm1824_vm3, %v1817_v27, 0.0  ;;  %v1826_v44 = vsel %vm1824_vm3, %v1821_v58, 0.0 }
 0x2bf   :  { %v1827_v30 = vadd.f32 %v1826_v44, %v1825_v59 }
 0x2c1   :  { %1828 = vadd.xlane.f32.xlu0 %v1827_v30 }
 0x2c2   :  { %2163 = shalt.err (!%p2160_p4)
}
 0x2c3   :  { %s2201_s14 = smov 256   ;;  %s2202_s15 = smov 16   ;;  %vm1830_vm1 = vcmask 0  }
 0x2c4   :  { %1843 = dma.vmem_to_hbm [thread:$0]  %s1838_s12, 2048, %s4072_s5, [#allocation4], %s2201_s14, %s2201_s14, %s2202_s15  }
 0x2c5   :  { %s2203_s18 = smov [#allocation5]  }
 0x2c6   :  { %s1850_s19 = sshll.u32 %s2203_s18, 4  ;;  %s1851_s19 = int_to_ptr.vmem [resolvable:$true] %s1850_s19 }
 0x2c7   :  { %s2172_s1 = scalar_lea.vmem %s1851_s19, 16  ;;  %s2176_s20 = scalar_lea.vmem %s1851_s19, 32 }
 0x2c8   :  { %p2173_p5 = scmp.ne.s32.totalorder %s1851_s19, %s2172_s1  ;;  %p2177_p6 = scmp.lt.s32.totalorder %s1851_s19, %s1851_s19 }
 0x2c9   :  { %p2178_p7 = scmp.lt.s32.totalorder %s2176_s20, %s2172_s1 }
 0x2cb   :  { %p2179_p8 = por %p2178_p7, %p2177_p6 }
 0x2cd   :  { %p2180_p9 = pnand %p2179_p8, %p2173_p5 }
 0x34a   :  { %v1829_v57 = vpop.xlane.xlu0 %1828 }
 0x34b   :  { %1831 = vst.msk [vmem:[#allocation5] sm:$0x1] %vm1830_vm1, %v1829_v57 }
 0x34c   :  { %2183 = shalt.err (!%p2180_p9)
}
 0x34d   :  { %1853 = dma.vmem_to_hbm [thread:$0]  %s1851_s19, 16, %s4073_s6, [#allocation6]  }
 0x34e   :  { %2192 = dma.done.wait [#allocation4], 2048  }
 0x34f   :  { %2193 = vsyncadd [#allocation4], 4294965248 }
 0x350   :  { %2194 = dma.done.wait [#allocation6], 16  }
 0x351   :  { %2195 = vsyncadd [#allocation6], 4294967280 }
 0x352   :  { %1860 = vsyncpa [#allocation4], 1 }
 0x353   :  { %1861 = vsyncpa [#allocation6], 1 }

</bundles_post_ra>
